<compile_context>
chip_gen: v7x
topology: tpu7x:2x2x1
jax: 0.10.0
libtpu: 0.0.40
codegen_flags: <defaults>
</compile_context>

<pallas_src>
import jax
import jax.numpy as jnp
from jax.experimental import pallas as pl
from jax.experimental.pallas import tpu as pltpu

IMAGE_COLORS = 3
IMAGE_HEIGHT = 32
IMAGE_WIDTH = 32
INPUT_SIZE = IMAGE_WIDTH * IMAGE_HEIGHT * IMAGE_COLORS  # 3072

HIDDEN_SIZE = 10
NUM_CLASSES = 3

LANE = 128             # TPU lane width: tiny feature dims are zero-padded to this
MAX_BATCH_TILE = 1024  # 12 MiB/buffer f32; double-buffered ~24 MiB -> fits v7x VMEM


def _round_up(n, m):
    return ((n + m - 1) // m) * m


def _mlp_kernel(x_ref, w1_ref, b1_ref, w2_ref, b2_ref, o_ref):
    # x_ref:  (TM, INPUT_SIZE)
    # w1_ref: (INPUT_SIZE, HP)   zero-padded, lane-dense
    # b1_ref: (1, HP)
    # w2_ref: (HP, CP)
    # b2_ref: (1, CP)
    # o_ref:  (TM, CP)
    h = jnp.dot(x_ref[...], w1_ref[...], preferred_element_type=jnp.float32)
    h = jnp.maximum(h + b1_ref[...], 0.0)          # ReLU
    o = jnp.dot(h, w2_ref[...], preferred_element_type=jnp.float32)
    o_ref[...] = (o + b2_ref[...]).astype(o_ref.dtype)


def pad_params(w1, b1, w2, b2):
    """Lane-pad hidden/class dims to multiples of 128 ONCE, outside the hot path.

    Zero padding is numerically exact: ReLU(0 + 0) = 0 and zero rows of w2
    contribute nothing to the real output columns.
    """
    in_size, hidden = w1.shape
    classes = w2.shape[1]
    hp = _round_up(max(hidden, LANE), LANE)
    cp = _round_up(max(classes, LANE), LANE)
    w1_p = jnp.zeros((in_size, hp), jnp.float32).at[:, :hidden].set(w1)
    b1_p = jnp.zeros((1, hp), jnp.float32).at[:, :hidden].set(b1.reshape(1, -1))
    w2_p = jnp.zeros((hp, cp), jnp.float32).at[:hidden, :classes].set(w2)
    b2_p = jnp.zeros((1, cp), jnp.float32).at[:, :classes].set(b2.reshape(1, -1))
    return (w1_p, b1_p, w2_p, b2_p, classes)


def _pick_batch_tile(B):
    # At least 2 grid steps when possible so the "parallel" batch axis can be
    # sharded across the two TensorCores on v7x; multiple of 8 sublanes; capped
    # so the double-buffered x stream stays comfortably inside VMEM.
    tm = _round_up(max(pl.cdiv(B, 2), 1), 8)
    return min(MAX_BATCH_TILE, tm)


def cifar100_forward(x, padded_params):
    """x: (B, 32, 32, 3) float32 -> logits (B, num_classes) float32."""
    w1_p, b1_p, w2_p, b2_p, classes = padded_params

    B = x.shape[0]
    x_flat = x.reshape(B, -1).astype(jnp.float32)   # nn.Flatten()
    in_size = x_flat.shape[1]
    assert in_size == INPUT_SIZE
    hp = w1_p.shape[1]
    cp = w2_p.shape[1]

    tm = _pick_batch_tile(B)
    grid = (pl.cdiv(B, tm),)   # ragged last block handled by masked DMA — no jnp.pad

    # Every operand is double-buffered by the auto-pipeline: size the scoped-VMEM
    # limit explicitly (v5e default is only 16 MiB) with headroom.
    footprint = 2 * 4 * (tm * in_size        # x tiles
                         + in_size * hp      # w1
                         + hp * cp           # w2
                         + hp + cp           # biases
                         + tm * cp)          # output tiles
    vmem_limit = max(32 << 20, footprint + (8 << 20))

    grid_spec = pltpu.PrefetchScalarGridSpec(
        num_scalar_prefetch=0,
        grid=grid,
        in_specs=[
            pl.BlockSpec((tm, in_size), lambda i: (i, 0)),   # streamed / pipelined
            pl.BlockSpec((in_size, hp), lambda i: (0, 0)),   # VMEM-resident weights
            pl.BlockSpec((1, hp), lambda i: (0, 0)),
            pl.BlockSpec((hp, cp), lambda i: (0, 0)),
            pl.BlockSpec((1, cp), lambda i: (0, 0)),
        ],
        out_specs=pl.BlockSpec((tm, cp), lambda i: (i, 0)),  # lane-dense stores
    )

    out_padded = pl.pallas_call(
        _mlp_kernel,
        out_shape=jax.ShapeDtypeStruct((B, cp), jnp.float32),
        grid_spec=grid_spec,
        compiler_params=pltpu.CompilerParams(
            dimension_semantics=("parallel",),   # shards batch tiles across TCs on v7x
            vmem_limit_bytes=vmem_limit,
        ),
    )(x_flat, w1_p, b1_p, w2_p, b2_p)

    return out_padded[:, :classes]


def init_params(key, hidden_size=HIDDEN_SIZE, num_classes=NUM_CLASSES):
    """Deterministic init mimicking nn.Linear default (U(-1/sqrt(fan_in), +))."""
    k1, k2, k3, k4 = jax.random.split(key, 4)
    bound1 = 1.0 / jnp.sqrt(INPUT_SIZE)
    bound2 = 1.0 / jnp.sqrt(hidden_size)
    w1 = jax.random.uniform(k1, (INPUT_SIZE, hidden_size), jnp.float32,
                            -bound1, bound1)
    b1 = jax.random.uniform(k2, (hidden_size,), jnp.float32, -bound1, bound1)
    w2 = jax.random.uniform(k3, (hidden_size, num_classes), jnp.float32,
                            -bound2, bound2)
    b2 = jax.random.uniform(k4, (num_classes,), jnp.float32, -bound2, bound2)
    return w1, b1, w2, b2


def reference_forward(x, w1, b1, w2, b2):
    x_flat = x.reshape(x.shape[0], -1)
    h = jnp.maximum(x_flat @ w1 + b1, 0.0)
    return h @ w2 + b2


if __name__ == "__main__":
    key = jax.random.PRNGKey(0)
    kx, kp, kx2 = jax.random.split(key, 3)

    w1, b1, w2, b2 = init_params(kp)
    padded = pad_params(w1, b1, w2, b2)   # hoisted out of the per-call forward

    # Small shape matching the module's expected input (like torch.randn(1,32,32,3)).
    B = 2
    x = jax.random.normal(kx, (B, IMAGE_WIDTH, IMAGE_HEIGHT, IMAGE_COLORS),
                          dtype=jnp.float32)
    logits = jax.block_until_ready(cifar100_forward(x, padded))
    ref = reference_forward(x, w1, b1, w2, b2)
    assert logits.shape == (B, NUM_CLASSES)
    assert jnp.allclose(logits, ref, atol=1e-4, rtol=1e-4)

    # Ragged batch (not a multiple of the tile) exercises the masked last block.
    B2 = 13
    x2 = jax.random.normal(kx2, (B2, IMAGE_WIDTH, IMAGE_HEIGHT, IMAGE_COLORS),
                           dtype=jnp.float32)
    logits2 = jax.block_until_ready(cifar100_forward(x2, padded))
    ref2 = reference_forward(x2, w1, b1, w2, b2)
    assert logits2.shape == (B2, NUM_CLASSES)
    assert jnp.allclose(logits2, ref2, atol=1e-4, rtol=1e-4)

    print("KERNEL_OK")
</pallas_src>

<mosaic_0001>
module attributes {stable_mosaic.version = 11 : i64} {
  func.func @_mlp_kernel(%arg0: i32, %arg1: memref<8x3072xf32, #tpu.memory_space<vmem>>, %arg2: memref<3072x128xf32, #tpu.memory_space<vmem>>, %arg3: memref<1x128xf32, #tpu.memory_space<vmem>>, %arg4: memref<128x128xf32, #tpu.memory_space<vmem>>, %arg5: memref<1x128xf32, #tpu.memory_space<vmem>>, %arg6: memref<8x128xf32, #tpu.memory_space<vmem>>) attributes {dimension_semantics = [#tpu.dimension_semantics<parallel>], iteration_bounds = array<i64: 1>, scalar_prefetch = 0 : i64, scratch_operands = 0 : i64, tpu.core_type = #tpu.core_type<tc>, window_params = [{transform_indices = @transform_0, window_bounds = array<i64: 8, 3072>}, {pipeline_mode = #tpu.pipeline_mode<synchronous>, transform_indices = @transform_1, window_bounds = array<i64: 3072, 128>}, {pipeline_mode = #tpu.pipeline_mode<synchronous>, transform_indices = @transform_2, window_bounds = array<i64: 1, 128>}, {pipeline_mode = #tpu.pipeline_mode<synchronous>, transform_indices = @transform_3, window_bounds = array<i64: 128, 128>}, {pipeline_mode = #tpu.pipeline_mode<synchronous>, transform_indices = @transform_4, window_bounds = array<i64: 1, 128>}, {transform_indices = @transform_5, window_bounds = array<i64: 8, 128>}]} {
    %c0 = arith.constant 0 : index
    %c0_0 = arith.constant 0 : index
    %0 = vector.load %arg1[%c0, %c0_0] : memref<8x3072xf32, #tpu.memory_space<vmem>>, vector<8x3072xf32>
    %c0_1 = arith.constant 0 : index
    %c0_2 = arith.constant 0 : index
    %1 = vector.load %arg2[%c0_1, %c0_2] : memref<3072x128xf32, #tpu.memory_space<vmem>>, vector<3072x128xf32>
    %cst = arith.constant dense<0.000000e+00> : vector<8x128xf32>
    %2 = tpu.matmul %0, %1, %cst {dimension_numbers = #tpu.dot_dimension_numbers<[1], [0], [0], [1], [0, 0, 1, 1], [], []>} : vector<8x3072xf32>, vector<3072x128xf32>, vector<8x128xf32> -> vector<8x128xf32>
    %c0_3 = arith.constant 0 : index
    %c0_4 = arith.constant 0 : index
    %3 = vector.load %arg3[%c0_3, %c0_4] : memref<1x128xf32, #tpu.memory_space<vmem>>, vector<1x128xf32>
    %4 = vector.broadcast %3 : vector<1x128xf32> to vector<8x128xf32>
    %5 = arith.addf %2, %4 : vector<8x128xf32>
    %cst_5 = arith.constant 0.000000e+00 : f32
    %6 = vector.broadcast %cst_5 : f32 to vector<8x128xf32>
    %7 = arith.maximumf %5, %6 : vector<8x128xf32>
    %c0_6 = arith.constant 0 : index
    %c0_7 = arith.constant 0 : index
    %8 = vector.load %arg4[%c0_6, %c0_7] : memref<128x128xf32, #tpu.memory_space<vmem>>, vector<128x128xf32>
    %cst_8 = arith.constant dense<0.000000e+00> : vector<8x128xf32>
    %9 = tpu.matmul %7, %8, %cst_8 {dimension_numbers = #tpu.dot_dimension_numbers<[1], [0], [0], [1], [0, 0, 1, 1], [], []>} : vector<8x128xf32>, vector<128x128xf32>, vector<8x128xf32> -> vector<8x128xf32>
    %c0_9 = arith.constant 0 : index
    %c0_10 = arith.constant 0 : index
    %10 = vector.load %arg5[%c0_9, %c0_10] : memref<1x128xf32, #tpu.memory_space<vmem>>, vector<1x128xf32>
    %11 = vector.broadcast %10 : vector<1x128xf32> to vector<8x128xf32>
    %12 = arith.addf %9, %11 : vector<8x128xf32>
    %c0_11 = arith.constant 0 : index
    %c0_12 = arith.constant 0 : index
    %13 = vector.load %arg6[%c0_11, %c0_12] : memref<8x128xf32, #tpu.memory_space<vmem>>, vector<8x128xf32>
    tpu.vector_store %arg6[%c0_11, %c0_12], %12 {strides = array<i32>} : memref<8x128xf32, #tpu.memory_space<vmem>>, vector<8x128xf32>,
    return
  }
  func.func @transform_0(%arg0: i32) -> (i32, i32) {
    %c0_i32 = arith.constant 0 : i32
    %c0_i32_0 = arith.constant 0 : i32
    return %arg0, %c0_i32 : i32, i32
  }
  func.func @transform_1(%arg0: i32) -> (i32, i32) {
    %c0_i32 = arith.constant 0 : i32
    %c0_i32_0 = arith.constant 0 : i32
    %c0_i32_1 = arith.constant 0 : i32
    return %c0_i32, %c0_i32_0 : i32, i32
  }
  func.func @transform_2(%arg0: i32) -> (i32, i32) {
    %c0_i32 = arith.constant 0 : i32
    %c0_i32_0 = arith.constant 0 : i32
    %c0_i32_1 = arith.constant 0 : i32
    return %c0_i32, %c0_i32_0 : i32, i32
  }
  func.func @transform_3(%arg0: i32) -> (i32, i32) {
    %c0_i32 = arith.constant 0 : i32
    %c0_i32_0 = arith.constant 0 : i32
    %c0_i32_1 = arith.constant 0 : i32
    return %c0_i32, %c0_i32_0 : i32, i32
  }
  func.func @transform_4(%arg0: i32) -> (i32, i32) {
    %c0_i32 = arith.constant 0 : i32
    %c0_i32_0 = arith.constant 0 : i32
    %c0_i32_1 = arith.constant 0 : i32
    return %c0_i32, %c0_i32_0 : i32, i32
  }
  func.func @transform_5(%arg0: i32) -> (i32, i32) {
    %c0_i32 = arith.constant 0 : i32
    %c0_i32_0 = arith.constant 0 : i32
    return %arg0, %c0_i32 : i32, i32
  }
}

</mosaic_0001>

<bundles_post_ra>
// kernel: tpu_custom_call.1
= control target key start
LH: loop header
LB: loop body
LE: loop exit
PB: predicated region body
PF: predicated region fallthrough
CT: control target
= control target key end

     0   :  { %10 = vsyncpa [#allocation3], 0  ;;  %s3016_s0 = inlined_call_operand.hbm [shape: f32[2,3072], index: 0, kind: input, shape index: {}]   ;;  %s3017_s1 = inlined_call_operand.hbm [shape: f32[3072,128], index: 1, kind: input, shape index: {}]   ;;  %s3018_s2 = inlined_call_operand.hbm [shape: f32[1,128], index: 2, kind: input, shape index: {}]   ;;  %s3019_s3 = inlined_call_operand.hbm [shape: f32[128,128], index: 3, kind: input, shape index: {}]   ;;  %s3020_s4 = inlined_call_operand.hbm [shape: f32[1,128], index: 4, kind: input, shape index: {}]   ;;  %s3021_s5 = inlined_call_operand.hbm [shape: f32[2,128], index: 5, kind: output, shape index: {}]  }
   0x1   :  { %11 = vsyncpa [#allocation6], 0 }
   0x2   :  { %12 = vsyncpa [#allocation9], 0 }
   0x3   :  { %13 = vsyncpa [#allocation4], 0 }
   0x4   :  { %18 = vsyncadd [#allocation3], 2304  ;;  %s2792_s18 = smov [#allocation5]   ;;  %s2652_s22 = scalar_lea.hbm %s3017_s1, 49152 }
   0x5   :  { %s31_s19 = sshll.u32 %s2792_s18, 4  ;;  %p2653_p0 = scmp.ne.s32.totalorder %s3017_s1, %s2652_s22  ;;  %s32_s19 = int_to_ptr.vmem [resolvable:$true] %s31_s19 }
   0x6   :  { %p2656_p1 = scmp.lt.u32.totalorder %s2652_s22, %s3017_s1 }
   0x8   :  { %p2658_p2 = pnand %p2656_p1, %p2653_p0 }
   0xa   :  { %2661 = shalt.err (!%p2658_p2)
}
   0xb   :  { %s2662_s27 = scalar_lea.vmem %s32_s19, 49152  ;;  %p2667_p4 = scmp.lt.s32.totalorder %s32_s19, %s32_s19 }
   0xc   :  { %p2663_p3 = scmp.ne.s32.totalorder %s32_s19, %s2662_s27  ;;  %p2668_p5 = scmp.lt.s32.totalorder %s2662_s27, %s2662_s27 }
   0xe   :  { %p2669_p6 = por %p2668_p5, %p2667_p4 }
  0x10   :  { %p2670_p7 = pnand %p2669_p6, %p2663_p3 }
  0x12   :  { %2673 = shalt.err (!%p2670_p7)
}
  0x13   :  { %s2793_s28 = smov 128   ;;  %s2794_s29 = smov 8  }
  0x14   :  { %37 = dma.hbm_to_vmem [thread:$0]  %s3017_s1, 49152, %s32_s19, [#allocation6], %s2793_s28, %s2793_s28, %s2794_s29  }
  0x15   :  { %s2795_s7 = smov [#allocation8]   ;;  %s2796_s9 = smov [#allocation2]  }
  0x16   :  { %s53_s8 = sshll.u32 %s2795_s7, 4  ;;  %s19_s10 = sshll.u32 %s2796_s9, 4  ;;  %s54_s8 = int_to_ptr.vmem [resolvable:$true] %s53_s8  ;;  %s20_s10 = int_to_ptr.vmem [resolvable:$true] %s19_s10 }
  0x17   :  { %s2674_s13 = scalar_lea.hbm %s3019_s3, 2048 }
  0x18   :  { %p2675_p8 = scmp.ne.s32.totalorder %s3019_s3, %s2674_s13  ;;  %p2678_p9 = scmp.lt.u32.totalorder %s2674_s13, %s3019_s3 }
  0x1a   :  { %p2680_p10 = pnand %p2678_p9, %p2675_p8 }
  0x1c   :  { %2683 = shalt.err (!%p2680_p10)
}
  0x1d   :  { %s2684_s1 = scalar_lea.vmem %s54_s8, 2048  ;;  %p2689_p12 = scmp.lt.s32.totalorder %s54_s8, %s54_s8 }
  0x1e   :  { %p2685_p11 = scmp.ne.s32.totalorder %s54_s8, %s2684_s1  ;;  %p2690_p13 = scmp.lt.s32.totalorder %s2684_s1, %s2684_s1 }
  0x20   :  { %p2691_p0 = por %p2690_p13, %p2689_p12 }
  0x22   :  { %p2692_p1 = pnand %p2691_p0, %p2685_p11 }
  0x24   :  { %2695 = shalt.err (!%p2692_p1)
}
  0x25   :  { %59 = dma.hbm_to_vmem [thread:$0]  %s3019_s3, 2048, %s54_s8, [#allocation9], %s2793_s28, %s2793_s28, %s2794_s29  }
  0x26   :  { %s2696_s22 = scalar_lea.hbm %s3016_s0, 768 }
  0x27   :  { %p2697_p2 = scmp.ne.s32.totalorder %s3016_s0, %s2696_s22  ;;  %p2700_p3 = scmp.lt.u32.totalorder %s2696_s22, %s3016_s0 }
  0x29   :  { %p2702_p4 = pnand %p2700_p3, %p2697_p2 }
  0x2b   :  { %2705 = shalt.err (!%p2702_p4)
}
  0x2c   :  { %s2706_s27 = scalar_lea.vmem %s20_s10, 768  ;;  %s2710_s30 = scalar_lea.vmem %s20_s10, 3072 }
  0x2d   :  { %p2707_p5 = scmp.ne.s32.totalorder %s20_s10, %s2706_s27  ;;  %p2711_p6 = scmp.lt.s32.totalorder %s20_s10, %s20_s10 }
  0x2e   :  { %p2712_p7 = scmp.lt.s32.totalorder %s2710_s30, %s2706_s27 }
  0x30   :  { %p2713_p8 = por %p2712_p7, %p2711_p6 }
  0x32   :  { %p2714_p9 = pnand %p2713_p8, %p2707_p5 }
  0x34   :  { %2717 = shalt.err (!%p2714_p9)
}
  0x35   :  { %s2797_s3 = smov 768   ;;  %s2798_s28 = smov 48  }
  0x36   :  { %25 = dma.hbm_to_vmem [thread:$0]  %s3016_s0, 768, %s20_s10, [#allocation3], %s2797_s3, %s2797_s3, %s2798_s28  }
  0x37   :  { %s2799_s7 = smov [#allocation7]   ;;  %s2800_s9 = smov [#allocation10]  }
  0x38   :  { %s44_s8 = sshll.u32 %s2799_s7, 4  ;;  %s66_s11 = sshll.u32 %s2800_s9, 4  ;;  %s45_s8 = int_to_ptr.vmem [resolvable:$true] %s44_s8  ;;  %s67_s11 = int_to_ptr.vmem [resolvable:$true] %s66_s11 }
  0x39   :  { %s2718_s14 = scalar_lea.hbm %s3018_s2, 16 }
  0x3a   :  { %p2719_p10 = scmp.ne.s32.totalorder %s3018_s2, %s2718_s14  ;;  %p2722_p11 = scmp.lt.u32.totalorder %s2718_s14, %s3018_s2 }
  0x3c   :  { %p2724_p12 = pnand %p2722_p11, %p2719_p10 }
  0x3e   :  { %2727 = shalt.err (!%p2724_p12)
}
  0x3f   :  { %s2728_s0 = scalar_lea.vmem %s45_s8, 16  ;;  %s2732_s10 = scalar_lea.vmem %s45_s8, 32 }
  0x40   :  { %p2729_p13 = scmp.ne.s32.totalorder %s45_s8, %s2728_s0  ;;  %p2733_p0 = scmp.lt.s32.totalorder %s45_s8, %s45_s8 }
  0x41   :  { %p2734_p1 = scmp.lt.s32.totalorder %s2732_s10, %s2728_s0 }
  0x43   :  { %p2735_p2 = por %p2734_p1, %p2733_p0 }
  0x45   :  { %p2736_p3 = pnand %p2735_p2, %p2729_p13 }
  0x47   :  { %2739 = shalt.err (!%p2736_p3)
}
  0x48   :  { %47 = dma.hbm_to_vmem [thread:$0]  %s3018_s2, 16, %s45_s8, [#allocation6]  }
  0x49   :  { %s2740_s22 = scalar_lea.hbm %s3020_s4, 16 }
  0x4a   :  { %p2741_p4 = scmp.ne.s32.totalorder %s3020_s4, %s2740_s22  ;;  %p2744_p5 = scmp.lt.u32.totalorder %s2740_s22, %s3020_s4 }
  0x4c   :  { %p2746_p6 = pnand %p2744_p5, %p2741_p4 }
  0x4e   :  { %2749 = shalt.err (!%p2746_p6)
}
  0x4f   :  { %s2750_s27 = scalar_lea.vmem %s67_s11, 16  ;;  %s2754_s30 = scalar_lea.vmem %s67_s11, 32 }
  0x50   :  { %p2751_p7 = scmp.ne.s32.totalorder %s67_s11, %s2750_s27  ;;  %p2755_p8 = scmp.lt.s32.totalorder %s67_s11, %s67_s11 }
  0x51   :  { %p2756_p9 = scmp.lt.s32.totalorder %s2754_s30, %s2750_s27 }
  0x53   :  { %p2757_p10 = por %p2756_p9, %p2755_p8 }
  0x55   :  { %p2758_p11 = pnand %p2757_p10, %p2751_p7 }
  0x57   :  { %2761 = shalt.err (!%p2758_p11)
}
  0x58   :  { %69 = dma.hbm_to_vmem [thread:$0]  %s3020_s4, 16, %s67_s11, [#allocation9]  }
  0x59   :  { %2784 = dma.done.wait [#allocation3], 3072  }
  0x5a   :  { %2785 = vsyncadd [#allocation3], 4294964224 }
  0x5b   :  { %2786 = dma.done.wait [#allocation6], 49168  }
  0x5c   :  { %2787 = vsyncadd [#allocation6], 4294918128 }
  0x5d   :  { %2788 = dma.done.wait [#allocation9], 2064  }
  0x5e   :  { %2789 = vsyncadd [#allocation9], 4294965232  ;;  %v125_v0 = vld [vmem:[#allocation5 + $0x80] sm:$0xff]  ;;  %v126_v1 = vld [vmem:[#allocation5 + $0x88] sm:$0xff]  ;;  %v2801_v51 = vmov 1983009808   ;;  %v531_v53 = vlaneseq }
  0x5f   :  { %v109_v2 = vld [vmem:[#allocation5] sm:$0xff]  ;;  %v2192_v3 = vpack.c.bf16 %v126_v1, %v125_v0  ;;  %v110_v4 = vld [vmem:[#allocation5 + $0x8] sm:$0xff]  ;;  %v127_v11 = vld [vmem:[#allocation5 + $0x90] sm:$0xff]  ;;  %v529_v52 = vunpack.c.l.s4 %v2801_v51  ;;  %vm2803_vm0 = vmmov 0  }
  0x60   :  { %v157_v5 = vld [vmem:[#allocation5 + $0x180] sm:$0xff]  ;;  %v158_v6 = vld [vmem:[#allocation5 + $0x188] sm:$0xff]  ;;  %v2194_v7 = vpack.c.bf16 %v110_v4, %v109_v2  ;;  %v128_v13 = vld [vmem:[#allocation5 + $0x98] sm:$0xff] }
  0x61   :  { %v2224_v8 = vpack.c.bf16 %v158_v6, %v157_v5  ;;  %v141_v9 = vld [vmem:[#allocation5 + $0x100] sm:$0xff]  ;;  %v142_v10 = vld [vmem:[#allocation5 + $0x108] sm:$0xff]  ;;  %2193 = vmatprep.subr.bf16.mxu0 %v2192_v3  ;;  %v111_v14 = vld [vmem:[#allocation5 + $0x10] sm:$0xff]  ;;  %v2196_v16 = vpack.c.bf16 %v128_v13, %v127_v11  ;;  %v530_v2 = vunpack.c.0.s8 %v529_v52  ;;  %v532_v3 = vshrl.u32 %v531_v53, 7 }
  0x62   :  { %v2226_v12 = vpack.c.bf16 %v142_v10, %v141_v9  ;;  %v112_v15 = vld [vmem:[#allocation5 + $0x18] sm:$0xff]  ;;  %2195 = vmatpush3.bf16.msra.mxu0 %v2194_v7  ;;  %v159_v18 = vld [vmem:[#allocation5 + $0x190] sm:$0xff]  ;;  %v129_v23 = vld [vmem:[#allocation5 + $0xa0] sm:$0xff] }
  0x63   :  { %2225 = vmatprep.subr.bf16.mxu1 %v2224_v8  ;;  %v2198_v17 = vpack.c.bf16 %v112_v15, %v111_v14  ;;  %v160_v19 = vld [vmem:[#allocation5 + $0x198] sm:$0xff]  ;;  %v143_v20 = vld [vmem:[#allocation5 + $0x110] sm:$0xff]  ;;  %v130_v24 = vld [vmem:[#allocation5 + $0xa8] sm:$0xff]  ;;  %2197 = vmatprep.subr.bf16.mxu0 %v2196_v16 }
  0x64   :  { %2227 = vmatpush3.bf16.msra.mxu1 %v2226_v12  ;;  %v2228_v21 = vpack.c.bf16 %v160_v19, %v159_v18  ;;  %v144_v22 = vld [vmem:[#allocation5 + $0x118] sm:$0xff]  ;;  %v2200_v26 = vpack.c.bf16 %v130_v24, %v129_v23  ;;  %v113_v27 = vld [vmem:[#allocation5 + $0x20] sm:$0xff]  ;;  %v114_v28 = vld [vmem:[#allocation5 + $0x28] sm:$0xff] }
  0x65   :  { %v2230_v25 = vpack.c.bf16 %v144_v22, %v143_v20  ;;  %v161_v29 = vld [vmem:[#allocation5 + $0x1a0] sm:$0xff]  ;;  %v162_v30 = vld [vmem:[#allocation5 + $0x1a8] sm:$0xff]  ;;  %v2202_v33 = vpack.c.bf16 %v114_v28, %v113_v27  ;;  %v131_v35 = vld [vmem:[#allocation5 + $0xb0] sm:$0xff] }
  0x66   :  { %2229 = vmatprep.subr.bf16.mxu1 %v2228_v21  ;;  %v145_v31 = vld [vmem:[#allocation5 + $0x120] sm:$0xff]  ;;  %v146_v32 = vld [vmem:[#allocation5 + $0x128] sm:$0xff]  ;;  %2199 = vmatpush3.bf16.msra.mxu0 %v2198_v17  ;;  %v2232_v34 = vpack.c.bf16 %v162_v30, %v161_v29  ;;  %v132_v36 = vld [vmem:[#allocation5 + $0xb8] sm:$0xff]  ;;  %v2898_v21 = vsub.s32 %v530_v2, %v532_v3 }
  0x67   :  { %v115_v37 = vld [vmem:[#allocation5 + $0x30] sm:$0xff]  ;;  %2201 = vmatprep.subr.bf16.mxu0 %v2200_v26  ;;  %v2234_v38 = vpack.c.bf16 %v146_v32, %v145_v31  ;;  %v2204_v39 = vpack.c.bf16 %v132_v36, %v131_v35  ;;  %v116_v40 = vld [vmem:[#allocation5 + $0x38] sm:$0xff]  ;;  %v133_v46 = vld [vmem:[#allocation5 + $0xc0] sm:$0xff] }
  0x68   :  { %2231 = vmatpush3.bf16.msra.mxu1 %v2230_v25  ;;  %v163_v41 = vld [vmem:[#allocation5 + $0x1b0] sm:$0xff]  ;;  %v164_v42 = vld [vmem:[#allocation5 + $0x1b8] sm:$0xff]  ;;  %v134_v47 = vld [vmem:[#allocation5 + $0xc8] sm:$0xff]  ;;  %v2206_v48 = vpack.c.bf16 %v116_v40, %v115_v37 }
  0x69   :  { %2233 = vmatprep.subr.bf16.mxu1 %v2232_v34  ;;  %v2236_v43 = vpack.c.bf16 %v164_v42, %v163_v41  ;;  %v147_v44 = vld [vmem:[#allocation5 + $0x130] sm:$0xff]  ;;  %v148_v45 = vld [vmem:[#allocation5 + $0x138] sm:$0xff]  ;;  %v165_v49 = vld [vmem:[#allocation5 + $0x1c0] sm:$0xff]  ;;  %v2208_v55 = vpack.c.bf16 %v134_v47, %v133_v46 }
  0x6a   :  { %2203 = vmatpush3.bf16.msra.mxu0 %v2202_v33  ;;  %v166_v50 = vld [vmem:[#allocation5 + $0x1c8] sm:$0xff]  ;;  %v2238_v54 = vpack.c.bf16 %v148_v45, %v147_v44  ;;  %v117_v56 = vld [vmem:[#allocation5 + $0x40] sm:$0xff]  ;;  %v135_v61 = vld [vmem:[#allocation5 + $0xd0] sm:$0xff] }
  0x6b   :  { %2205 = vmatprep.subr.bf16.mxu0 %v2204_v39  ;;  %v118_v57 = vld [vmem:[#allocation5 + $0x48] sm:$0xff]  ;;  %v149_v58 = vld [vmem:[#allocation5 + $0x140] sm:$0xff]  ;;  %v2240_v59 = vpack.c.bf16 %v166_v50, %v165_v49  ;;  %v136_v62 = vld [vmem:[#allocation5 + $0xd8] sm:$0xff] }
  0x6c   :  { %2235 = vmatpush3.bf16.msra.mxu1 %v2234_v38  ;;  %v150_v60 = vld [vmem:[#allocation5 + $0x148] sm:$0xff]  ;;  %v167_v63 = vld [vmem:[#allocation5 + $0x1d0] sm:$0xff]  ;;  %v168_v0 = vld [vmem:[#allocation5 + $0x1d8] sm:$0xff]  ;;  %v2210_v1 = vpack.c.bf16 %v118_v57, %v117_v56  ;;  %v2212_v5 = vpack.c.bf16 %v136_v62, %v135_v61 }
  0x6d   :  { %2237 = vmatprep.subr.bf16.mxu1 %v2236_v43  ;;  %v2242_v4 = vpack.c.bf16 %v150_v60, %v149_v58  ;;  %v119_v6 = vld [vmem:[#allocation5 + $0x50] sm:$0xff]  ;;  %v120_v7 = vld [vmem:[#allocation5 + $0x58] sm:$0xff]  ;;  %v2244_v9 = vpack.c.bf16 %v168_v0, %v167_v63  ;;  %v137_v11 = vld [vmem:[#allocation5 + $0xe0] sm:$0xff] }
  0x6e   :  { %2207 = vmatpush3.bf16.msra.mxu0 %v2206_v48  ;;  %v151_v8 = vld [vmem:[#allocation5 + $0x150] sm:$0xff]  ;;  %v152_v10 = vld [vmem:[#allocation5 + $0x158] sm:$0xff]  ;;  %v138_v12 = vld [vmem:[#allocation5 + $0xe8] sm:$0xff]  ;;  %v2214_v17 = vpack.c.bf16 %v120_v7, %v119_v6 }
  0x6f   :  { %2209 = vmatprep.subr.bf16.mxu0 %v2208_v55  ;;  %v121_v13 = vld [vmem:[#allocation5 + $0x60] sm:$0xff]  ;;  %v122_v14 = vld [vmem:[#allocation5 + $0x68] sm:$0xff]  ;;  %v139_v20 = vld [vmem:[#allocation5 + $0xf0] sm:$0xff]  ;;  %v2246_v22 = vpack.c.bf16 %v152_v10, %v151_v8  ;;  %v2216_v23 = vpack.c.bf16 %v138_v12, %v137_v11 }
  0x70   :  { %2239 = vmatpush3.bf16.msra.mxu1 %v2238_v54  ;;  %v169_v15 = vld [vmem:[#allocation5 + $0x1e0] sm:$0xff]  ;;  %v170_v16 = vld [vmem:[#allocation5 + $0x1e8] sm:$0xff]  ;;  %v140_v24 = vld [vmem:[#allocation5 + $0xf8] sm:$0xff]  ;;  %v2218_v30 = vpack.c.bf16 %v122_v14, %v121_v13 }
  0x71   :  { %2241 = vmatprep.subr.bf16.mxu1 %v2240_v59  ;;  %v153_v18 = vld [vmem:[#allocation5 + $0x160] sm:$0xff]  ;;  %v154_v19 = vld [vmem:[#allocation5 + $0x168] sm:$0xff]  ;;  %v2248_v25 = vpack.c.bf16 %v170_v16, %v169_v15  ;;  %v171_v27 = vld [vmem:[#allocation5 + $0x1f0] sm:$0xff]  ;;  %v2220_v35 = vpack.c.bf16 %v140_v24, %v139_v20 }
  0x72   :  { %2211 = vmatpush3.bf16.msra.mxu0 %v2210_v1  ;;  %v2616_v26 = vld [vmem:[#allocation2] ss:$48 sps:$4 sm:$0xff]   ;;  %v172_v28 = vld [vmem:[#allocation5 + $0x1f8] sm:$0xff]  ;;  %v2620_v32 = vld [vmem:[#allocation2 + $0x4] ss:$48 sps:$4 sm:$0xff]   ;;  %v2250_v34 = vpack.c.bf16 %v154_v19, %v153_v18 }
  0x73   :  { %2213 = vmatprep.subr.bf16.mxu0 %v2212_v5  ;;  %v2618_v29 = vld [vmem:[#allocation2 + $0x60] ss:$48 sps:$4 sm:$0xff]   ;;  %v534_v31 = vrot.slane %v2616_v26, %v2898_v21  ;;  %v2621_v33 = vld [vmem:[#allocation2 + $0x64] ss:$48 sps:$4 sm:$0xff]   ;;  %v124_v37 = vld [vmem:[#allocation5 + $0x78] sm:$0xff]  ;;  %v2252_v40 = vpack.c.bf16 %v172_v28, %v171_v27  ;;  %v541_v44 = vrot.slane %v2620_v32, %v2898_v21 }
  0x74   :  { %2243 = vmatpush3.bf16.msra.mxu1 %v2242_v4  ;;  %v123_v36 = vld [vmem:[#allocation5 + $0x70] sm:$0xff]  ;;  %v548_v39 = vrot.slane %v2618_v29, %v2898_v21  ;;  %v156_v41 = vld [vmem:[#allocation5 + $0x178] sm:$0xff]  ;;  %v189_v42 = vld [vmem:[#allocation5 + $0x280] sm:$0xff]  ;;  %v555_v45 = vrot.slane %v2621_v33, %v2898_v21 }
  0x75   :  { %2245 = vmatprep.subr.bf16.mxu1 %v2244_v9  ;;  %v155_v38 = vld [vmem:[#allocation5 + $0x170] sm:$0xff]  ;;  %v190_v43 = vld [vmem:[#allocation5 + $0x288] sm:$0xff]  ;;  %v221_v47 = vld [vmem:[#allocation5 + $0x380] sm:$0xff]  ;;  %v2222_v49 = vpack.c.bf16 %v124_v37, %v123_v36 }
  0x76   :  { %2215 = vmatpush3.bf16.msra.mxu0 %v2214_v17  ;;  %v557_v46 = vcombine.high %v534_v31, %v548_v39  ;;  %v222_v48 = vld [vmem:[#allocation5 + $0x388] sm:$0xff]  ;;  %v559_v50 = vcombine.high %v541_v44, %v555_v45  ;;  %v2254_v51 = vpack.c.bf16 %v156_v41, %v155_v38  ;;  %v2256_v52 = vpack.c.bf16 %v190_v43, %v189_v42  ;;  %v173_v53 = vld [vmem:[#allocation5 + $0x200] sm:$0xff]  ;;  %v191_v58 = vld [vmem:[#allocation5 + $0x290] sm:$0xff] }
  0x77   :  { %2217 = vmatprep.subr.bf16.mxu0 %v2216_v23  ;;  %v174_v54 = vld [vmem:[#allocation5 + $0x208] sm:$0xff]  ;;  %v205_v55 = vld [vmem:[#allocation5 + $0x300] sm:$0xff]  ;;  %v2288_v56 = vpack.c.bf16 %v222_v48, %v221_v47  ;;  %v192_v59 = vld [vmem:[#allocation5 + $0x298] sm:$0xff]  ;;  %v556_v60 = vcombine.low %v534_v31, %v548_v39  ;;  %v558_v0 = vcombine.low %v541_v44, %v555_v45 }
  0x78   :  { %2247 = vmatpush3.bf16.msra.mxu1 %v2246_v22  ;;  %828 = vmatprep.mubr.f32.mxu0 %v557_v46  ;;  %v206_v57 = vld [vmem:[#allocation5 + $0x308] sm:$0xff]  ;;  %v223_v61 = vld [vmem:[#allocation5 + $0x390] sm:$0xff]  ;;  %v224_v62 = vld [vmem:[#allocation5 + $0x398] sm:$0xff]  ;;  %v2258_v63 = vpack.c.bf16 %v174_v54, %v173_v53  ;;  %v2260_v2 = vpack.c.bf16 %v192_v59, %v191_v58 }
  0x79   :  { %2249 = vmatprep.subr.bf16.mxu1 %v2248_v25  ;;  %898 = vmatprep.mubr.f32.mxu1 %v559_v50  ;;  %v2290_v1 = vpack.c.bf16 %v206_v57, %v205_v55  ;;  %v175_v3 = vld [vmem:[#allocation5 + $0x210] sm:$0xff]  ;;  %v176_v4 = vld [vmem:[#allocation5 + $0x218] sm:$0xff]  ;;  %v2292_v6 = vpack.c.bf16 %v224_v62, %v223_v61  ;;  %v193_v8 = vld [vmem:[#allocation5 + $0x2a0] sm:$0xff] }
  0x7a   :  { %2219 = vmatpush3.bf16.msra.mxu0 %v2218_v30  ;;  %v207_v5 = vld [vmem:[#allocation5 + $0x310] sm:$0xff]  ;;  %v208_v7 = vld [vmem:[#allocation5 + $0x318] sm:$0xff]  ;;  %v194_v9 = vld [vmem:[#allocation5 + $0x2a8] sm:$0xff]  ;;  %v2262_v12 = vpack.c.bf16 %v176_v4, %v175_v3 }
  0x7b   :  { %2221 = vmatprep.subr.bf16.mxu0 %v2220_v35  ;;  %v225_v10 = vld [vmem:[#allocation5 + $0x3a0] sm:$0xff]  ;;  %v226_v11 = vld [vmem:[#allocation5 + $0x3a8] sm:$0xff]  ;;  %v2294_v13 = vpack.c.bf16 %v208_v7, %v207_v5  ;;  %v2264_v14 = vpack.c.bf16 %v194_v9, %v193_v8  ;;  %v195_v20 = vld [vmem:[#allocation5 + $0x2b0] sm:$0xff] }
  0x7c   :  { %2251 = vmatpush3.bf16.msra.mxu1 %v2250_v34  ;;  %v177_v15 = vld [vmem:[#allocation5 + $0x220] sm:$0xff]  ;;  %v178_v16 = vld [vmem:[#allocation5 + $0x228] sm:$0xff]  ;;  %v2296_v18 = vpack.c.bf16 %v226_v11, %v225_v10  ;;  %v196_v22 = vld [vmem:[#allocation5 + $0x2b8] sm:$0xff] }
  0x7d   :  { %2253 = vmatprep.subr.bf16.mxu1 %v2252_v40  ;;  %v209_v17 = vld [vmem:[#allocation5 + $0x320] sm:$0xff]  ;;  %v210_v19 = vld [vmem:[#allocation5 + $0x328] sm:$0xff]  ;;  %v227_v23 = vld [vmem:[#allocation5 + $0x3b0] sm:$0xff]  ;;  %v2266_v25 = vpack.c.bf16 %v178_v16, %v177_v15  ;;  %v2268_v27 = vpack.c.bf16 %v196_v22, %v195_v20 }
  0x7e   :  { %2223 = vmatpush3.bf16.msra.mxu0 %v2222_v49  ;;  %v228_v24 = vld [vmem:[#allocation5 + $0x3b8] sm:$0xff]  ;;  %v2298_v26 = vpack.c.bf16 %v210_v19, %v209_v17  ;;  %v179_v28 = vld [vmem:[#allocation5 + $0x230] sm:$0xff]  ;;  %v197_v33 = vld [vmem:[#allocation5 + $0x2c0] sm:$0xff] }
  0x7f   :  { %2257 = vmatprep.subr.bf16.mxu0 %v2256_v52  ;;  %v180_v29 = vld [vmem:[#allocation5 + $0x238] sm:$0xff]  ;;  %v211_v30 = vld [vmem:[#allocation5 + $0x330] sm:$0xff]  ;;  %v2300_v31 = vpack.c.bf16 %v228_v24, %v227_v23  ;;  %v198_v34 = vld [vmem:[#allocation5 + $0x2c8] sm:$0xff] }
  0x80   :  { %2255 = vmatpush3.bf16.msra.mxu1 %v2254_v51  ;;  %v212_v32 = vld [vmem:[#allocation5 + $0x338] sm:$0xff]  ;;  %v181_v35 = vld [vmem:[#allocation5 + $0x240] sm:$0xff]  ;;  %v182_v36 = vld [vmem:[#allocation5 + $0x248] sm:$0xff]  ;;  %v2270_v39 = vpack.c.bf16 %v180_v29, %v179_v28  ;;  %v2272_v44 = vpack.c.bf16 %v198_v34, %v197_v33 }
  0x81   :  { %2289 = vmatprep.subr.bf16.mxu1 %v2288_v56  ;;  %829 = vmatmul.mubr.f32.vlgmr.msra.gmra.mrb[0].mxu0 %v556_v60  ;;  %v229_v37 = vld [vmem:[#allocation5 + $0x3c0] sm:$0xff]  ;;  %v230_v38 = vld [vmem:[#allocation5 + $0x3c8] sm:$0xff]  ;;  %v199_v42 = vld [vmem:[#allocation5 + $0x2d0] sm:$0xff]  ;;  %v2302_v43 = vpack.c.bf16 %v212_v32, %v211_v30  ;;  %v2274_v51 = vpack.c.bf16 %v182_v36, %v181_v35 }
  0x82   :  { %2259 = vmatpush3.bf16.msra.mxu0 %v2258_v63  ;;  %v213_v40 = vld [vmem:[#allocation5 + $0x340] sm:$0xff]  ;;  %v214_v41 = vld [vmem:[#allocation5 + $0x348] sm:$0xff]  ;;  %v200_v45 = vld [vmem:[#allocation5 + $0x2d8] sm:$0xff]  ;;  %v2304_v46 = vpack.c.bf16 %v230_v38, %v229_v37 }
  0x83   :  { %899 = vmatmul.mubr.f32.vlgmr.msra.gmra.mrb[0].mxu1 %v558_v0  ;;  %2261 = vmatprep.subr.bf16.mxu0 %v2260_v2  ;;  %v2622_v47 = vld [vmem:[#allocation2 + $0x8] ss:$48 sps:$4 sm:$0xff]   ;;  %v231_v48 = vld [vmem:[#allocation5 + $0x3d0] sm:$0xff]  ;;  %v2626_v53 = vld [vmem:[#allocation2 + $0xc] ss:$48 sps:$4 sm:$0xff]   ;;  %v2306_v55 = vpack.c.bf16 %v214_v41, %v213_v40  ;;  %v2276_v56 = vpack.c.bf16 %v200_v45, %v199_v42 }
  0x84   :  { %2291 = vmatpush3.bf16.msra.mxu1 %v2290_v1  ;;  %v232_v49 = vld [vmem:[#allocation5 + $0x3d8] sm:$0xff]  ;;  %v2905_v52 = vrot.slane %v2622_v47, %v2898_v21  ;;  %v183_v57 = vld [vmem:[#allocation5 + $0x250] sm:$0xff]  ;;  %v201_v63 = vld [vmem:[#allocation5 + $0x2e0] sm:$0xff]  ;;  %v2911_v1 = vrot.slane %v2626_v53, %v2898_v21 }
  0x85   :  { %2293 = vmatprep.subr.bf16.mxu1 %v2292_v6  ;;  %v2624_v50 = vld [vmem:[#allocation2 + $0x68] ss:$48 sps:$4 sm:$0xff]   ;;  %v2627_v54 = vld [vmem:[#allocation2 + $0x6c] ss:$48 sps:$4 sm:$0xff]   ;;  %v215_v59 = vld [vmem:[#allocation5 + $0x350] sm:$0xff]  ;;  %v2308_v61 = vpack.c.bf16 %v232_v49, %v231_v48 }
  0x86   :  { %2263 = vmatpush3.bf16.msra.mxu0 %v2262_v12  ;;  %v184_v58 = vld [vmem:[#allocation5 + $0x258] sm:$0xff]  ;;  %v2908_v60 = vrot.slane %v2624_v50, %v2898_v21  ;;  %v202_v0 = vld [vmem:[#allocation5 + $0x2e8] sm:$0xff]  ;;  %v2914_v2 = vrot.slane %v2627_v54, %v2898_v21  ;;  %v233_v3 = vld [vmem:[#allocation5 + $0x3e0] sm:$0xff] }
  0x87   :  { %2265 = vmatprep.subr.bf16.mxu0 %v2264_v14  ;;  %v216_v62 = vld [vmem:[#allocation5 + $0x358] sm:$0xff]  ;;  %v234_v4 = vld [vmem:[#allocation5 + $0x3e8] sm:$0xff]  ;;  %v2278_v6 = vpack.c.bf16 %v184_v58, %v183_v57  ;;  %v2280_v9 = vpack.c.bf16 %v202_v0, %v201_v63  ;;  %v185_v10 = vld [vmem:[#allocation5 + $0x260] sm:$0xff] }
  0x88   :  { %2295 = vmatpush3.bf16.msra.mxu1 %v2294_v13  ;;  %v593_v5 = vcombine.high %v2905_v52, %v2908_v60  ;;  %v595_v7 = vcombine.high %v2911_v1, %v2914_v2  ;;  %v2310_v8 = vpack.c.bf16 %v216_v62, %v215_v59  ;;  %v186_v11 = vld [vmem:[#allocation5 + $0x268] sm:$0xff]  ;;  %v217_v12 = vld [vmem:[#allocation5 + $0x360] sm:$0xff]  ;;  %v2312_v13 = vpack.c.bf16 %v234_v4, %v233_v3  ;;  %v203_v15 = vld [vmem:[#allocation5 + $0x2f0] sm:$0xff] }
  0x89   :  { %2297 = vmatprep.subr.bf16.mxu1 %v2296_v18  ;;  %v218_v14 = vld [vmem:[#allocation5 + $0x368] sm:$0xff]  ;;  %v204_v16 = vld [vmem:[#allocation5 + $0x2f8] sm:$0xff]  ;;  %v235_v17 = vld [vmem:[#allocation5 + $0x3f0] sm:$0xff]  ;;  %v2282_v19 = vpack.c.bf16 %v186_v11, %v185_v10  ;;  %v592_v42 = vcombine.low %v2905_v52, %v2908_v60 }
  0x8a   :  { %2267 = vmatpush3.bf16.msra.mxu0 %v2266_v25  ;;  %968 = vmatprep.mubr.f32.mxu0 %v593_v5  ;;  %v236_v18 = vld [vmem:[#allocation5 + $0x3f8] sm:$0xff]  ;;  %v2314_v20 = vpack.c.bf16 %v218_v14, %v217_v12  ;;  %v2284_v22 = vpack.c.bf16 %v204_v16, %v203_v15  ;;  %v187_v23 = vld [vmem:[#allocation5 + $0x270] sm:$0xff]  ;;  %v253_v28 = vld [vmem:[#allocation5 + $0x480] sm:$0xff] }
  0x8b   :  { %2269 = vmatprep.subr.bf16.mxu0 %v2268_v27  ;;  %1038 = vmatprep.mubr.f32.mxu1 %v595_v7  ;;  %v188_v24 = vld [vmem:[#allocation5 + $0x278] sm:$0xff]  ;;  %v219_v25 = vld [vmem:[#allocation5 + $0x370] sm:$0xff]  ;;  %v254_v29 = vld [vmem:[#allocation5 + $0x488] sm:$0xff] }
  0x8c   :  { %2299 = vmatpush3.bf16.msra.mxu1 %v2298_v26  ;;  %v2316_v26 = vpack.c.bf16 %v236_v18, %v235_v17  ;;  %v220_v27 = vld [vmem:[#allocation5 + $0x378] sm:$0xff]  ;;  %v285_v30 = vld [vmem:[#allocation5 + $0x580] sm:$0xff]  ;;  %v2286_v32 = vpack.c.bf16 %v188_v24, %v187_v23  ;;  %v2320_v34 = vpack.c.bf16 %v254_v29, %v253_v28  ;;  %v238_v36 = vld [vmem:[#allocation5 + $0x408] sm:$0xff] }
  0x8d   :  { %2301 = vmatprep.subr.bf16.mxu1 %v2300_v31  ;;  %v286_v31 = vld [vmem:[#allocation5 + $0x588] sm:$0xff]  ;;  %v2318_v33 = vpack.c.bf16 %v220_v27, %v219_v25  ;;  %v237_v35 = vld [vmem:[#allocation5 + $0x400] sm:$0xff]  ;;  %v255_v40 = vld [vmem:[#allocation5 + $0x490] sm:$0xff] }
  0x8e   :  { %2271 = vmatpush3.bf16.msra.mxu0 %v2270_v39  ;;  %v269_v37 = vld [vmem:[#allocation5 + $0x500] sm:$0xff]  ;;  %v2352_v38 = vpack.c.bf16 %v286_v31, %v285_v30  ;;  %v270_v39 = vld [vmem:[#allocation5 + $0x508] sm:$0xff]  ;;  %v256_v41 = vld [vmem:[#allocation5 + $0x498] sm:$0xff]  ;;  %v2322_v45 = vpack.c.bf16 %v238_v36, %v237_v35 }
  0x8f   :  { %2273 = vmatprep.subr.bf16.mxu0 %v2272_v44  ;;  %v288_v44 = vld [vmem:[#allocation5 + $0x598] sm:$0xff]  ;;  %v2354_v47 = vpack.c.bf16 %v270_v39, %v269_v37  ;;  %v2324_v48 = vpack.c.bf16 %v256_v41, %v255_v40  ;;  %v239_v49 = vld [vmem:[#allocation5 + $0x410] sm:$0xff]  ;;  %v241_v52 = vld [vmem:[#allocation5 + $0x420] sm:$0xff] }
  0x90   :  { %2303 = vmatpush3.bf16.msra.mxu1 %v2302_v43  ;;  %v287_v43 = vld [vmem:[#allocation5 + $0x590] sm:$0xff]  ;;  %v240_v50 = vld [vmem:[#allocation5 + $0x418] sm:$0xff]  ;;  %v242_v57 = vld [vmem:[#allocation5 + $0x428] sm:$0xff] }
  0x91   :  { %2305 = vmatprep.subr.bf16.mxu1 %v2304_v46  ;;  %v594_v46 = vcombine.low %v2911_v1, %v2914_v2  ;;  %v2356_v53 = vpack.c.bf16 %v288_v44, %v287_v43  ;;  %v272_v54 = vld [vmem:[#allocation5 + $0x518] sm:$0xff]  ;;  %v289_v58 = vld [vmem:[#allocation5 + $0x5a0] sm:$0xff]  ;;  %v290_v59 = vld [vmem:[#allocation5 + $0x5a8] sm:$0xff]  ;;  %v2326_v60 = vpack.c.bf16 %v240_v50, %v239_v49 }
  0x92   :  { %2275 = vmatpush3.bf16.msra.mxu0 %v2274_v51  ;;  %v271_v51 = vld [vmem:[#allocation5 + $0x510] sm:$0xff]  ;;  %v274_v62 = vld [vmem:[#allocation5 + $0x528] sm:$0xff]  ;;  %v260_v2 = vld [vmem:[#allocation5 + $0x4b8] sm:$0xff]  ;;  %v2360_v3 = vpack.c.bf16 %v290_v59, %v289_v58 }
  0x93   :  { %2277 = vmatprep.subr.bf16.mxu0 %v2276_v56  ;;  %v258_v56 = vld [vmem:[#allocation5 + $0x4a8] sm:$0xff]  ;;  %v259_v63 = vld [vmem:[#allocation5 + $0x4b0] sm:$0xff]  ;;  %v2358_v0 = vpack.c.bf16 %v272_v54, %v271_v51  ;;  %v244_v15 = vld [vmem:[#allocation5 + $0x438] sm:$0xff] }
  0x94   :  { %2307 = vmatpush3.bf16.msra.mxu1 %v2306_v55  ;;  %v257_v55 = vld [vmem:[#allocation5 + $0x4a0] sm:$0xff]  ;;  %v291_v5 = vld [vmem:[#allocation5 + $0x5b0] sm:$0xff]  ;;  %v278_v36 = vld [vmem:[#allocation5 + $0x548] sm:$0xff] }
  0x95   :  { %2309 = vmatprep.subr.bf16.mxu1 %v2308_v61  ;;  %v273_v61 = vld [vmem:[#allocation5 + $0x520] sm:$0xff]  ;;  %v2328_v1 = vpack.c.bf16 %v258_v56, %v257_v55  ;;  %v243_v14 = vld [vmem:[#allocation5 + $0x430] sm:$0xff]  ;;  %v296_v40 = vld [vmem:[#allocation5 + $0x5d8] sm:$0xff] }
  0x96   :  { %2279 = vmatpush3.bf16.msra.mxu0 %v2278_v6  ;;  %v2628_v4 = vld [vmem:[#allocation2 + $0x10] ss:$48 sps:$4 sm:$0xff]   ;;  %v292_v6 = vld [vmem:[#allocation5 + $0x5b8] sm:$0xff]  ;;  %v2632_v10 = vld [vmem:[#allocation2 + $0x14] ss:$48 sps:$4 sm:$0xff]   ;;  %v2362_v12 = vpack.c.bf16 %v274_v62, %v273_v61  ;;  %v2334_v28 = vpack.c.bf16 %v244_v15, %v243_v14 }
  0x97   :  { %2281 = vmatprep.subr.bf16.mxu0 %v2280_v9  ;;  %v2630_v7 = vld [vmem:[#allocation2 + $0x70] ss:$48 sps:$4 sm:$0xff]   ;;  %v2925_v9 = vrot.slane %v2628_v4, %v2898_v21  ;;  %v2633_v11 = vld [vmem:[#allocation2 + $0x74] ss:$48 sps:$4 sm:$0xff]   ;;  %v2364_v18 = vpack.c.bf16 %v292_v6, %v291_v5  ;;  %v2931_v23 = vrot.slane %v2632_v10, %v2898_v21  ;;  %v266_v50 = vld [vmem:[#allocation5 + $0x4e8] sm:$0xff] }
  0x98   :  { %2311 = vmatpush3.bf16.msra.mxu1 %v2310_v8  ;;  %v2330_v8 = vpack.c.bf16 %v242_v57, %v241_v52  ;;  %v275_v16 = vld [vmem:[#allocation5 + $0x530] sm:$0xff]  ;;  %v2928_v17 = vrot.slane %v2630_v7, %v2898_v21  ;;  %v2934_v24 = vrot.slane %v2633_v11, %v2898_v21  ;;  %v293_v25 = vld [vmem:[#allocation5 + $0x5c0] sm:$0xff]  ;;  %v250_v57 = vld [vmem:[#allocation5 + $0x468] sm:$0xff] }
  0x99   :  { %2313 = vmatprep.subr.bf16.mxu1 %v2312_v13  ;;  %v2332_v13 = vpack.c.bf16 %v260_v2, %v259_v63  ;;  %v263_v37 = vld [vmem:[#allocation5 + $0x4d0] sm:$0xff]  ;;  %v265_v49 = vld [vmem:[#allocation5 + $0x4e0] sm:$0xff]  ;;  %v268_v62 = vld [vmem:[#allocation5 + $0x4f8] sm:$0xff] }
  0x9a   :  { %2283 = vmatpush3.bf16.msra.mxu0 %v2282_v19  ;;  %v276_v19 = vld [vmem:[#allocation5 + $0x538] sm:$0xff]  ;;  %v629_v27 = vcombine.high %v2925_v9, %v2928_v17  ;;  %v631_v29 = vcombine.high %v2931_v23, %v2934_v24  ;;  %v295_v39 = vld [vmem:[#allocation5 + $0x5d0] sm:$0xff]  ;;  %v297_v51 = vld [vmem:[#allocation5 + $0x5e0] sm:$0xff]  ;;  %v2344_v56 = vpack.c.bf16 %v266_v50, %v265_v49 }
  0x9b   :  { %2285 = vmatprep.subr.bf16.mxu0 %v2284_v22  ;;  %v262_v22 = vld [vmem:[#allocation5 + $0x4c8] sm:$0xff]  ;;  %v2366_v30 = vpack.c.bf16 %v276_v19, %v275_v16  ;;  %v247_v44 = vld [vmem:[#allocation5 + $0x450] sm:$0xff]  ;;  %v249_v52 = vld [vmem:[#allocation5 + $0x460] sm:$0xff] }
  0x9c   :  { %2315 = vmatpush3.bf16.msra.mxu1 %v2314_v20  ;;  %v261_v20 = vld [vmem:[#allocation5 + $0x4c0] sm:$0xff]  ;;  %v267_v61 = vld [vmem:[#allocation5 + $0x4f0] sm:$0xff]  ;;  %v252_v5 = vld [vmem:[#allocation5 + $0x478] sm:$0xff] }
  0x9d   :  { %2317 = vmatprep.subr.bf16.mxu1 %v2316_v26  ;;  %v294_v26 = vld [vmem:[#allocation5 + $0x5c8] sm:$0xff]  ;;  %v2336_v31 = vpack.c.bf16 %v262_v22, %v261_v20  ;;  %v281_v58 = vld [vmem:[#allocation5 + $0x560] sm:$0xff]  ;;  %v299_v63 = vld [vmem:[#allocation5 + $0x5f0] sm:$0xff] }
  0x9e   :  { %2287 = vmatpush3.bf16.msra.mxu0 %v2286_v32  ;;  %v245_v32 = vld [vmem:[#allocation5 + $0x440] sm:$0xff]  ;;  %v2368_v35 = vpack.c.bf16 %v294_v26, %v293_v25  ;;  %v251_v4 = vld [vmem:[#allocation5 + $0x470] sm:$0xff]  ;;  %v318_v11 = vld [vmem:[#allocation5 + $0x688] sm:$0xff] }
  0x9f   :  { %2321 = vmatprep.subr.bf16.mxu0 %v2320_v34  ;;  %v277_v34 = vld [vmem:[#allocation5 + $0x540] sm:$0xff]  ;;  %v283_v6 = vld [vmem:[#allocation5 + $0x570] sm:$0xff]  ;;  %v350_v15 = vld [vmem:[#allocation5 + $0x788] sm:$0xff]  ;;  %v2350_v16 = vpack.c.bf16 %v252_v5, %v251_v4 }
  0xa0   :  { %2319 = vmatpush3.bf16.msra.mxu1 %v2318_v33  ;;  %v246_v33 = vld [vmem:[#allocation5 + $0x448] sm:$0xff]  ;;  %v317_v10 = vld [vmem:[#allocation5 + $0x680] sm:$0xff]  ;;  %v319_v20 = vld [vmem:[#allocation5 + $0x690] sm:$0xff] }
  0xa1   :  { %2353 = vmatprep.subr.bf16.mxu1 %v2352_v38  ;;  %969 = vmatmul.mubr.f32.vlgmr.msra.gmra.mrb[2].mxu0 %v592_v42  ;;  %v264_v38 = vld [vmem:[#allocation5 + $0x4d8] sm:$0xff]  ;;  %v2338_v41 = vpack.c.bf16 %v246_v33, %v245_v32  ;;  %v2370_v42 = vpack.c.bf16 %v278_v36, %v277_v34  ;;  %v349_v14 = vld [vmem:[#allocation5 + $0x780] sm:$0xff]  ;;  %v334_v19 = vld [vmem:[#allocation5 + $0x708] sm:$0xff]  ;;  %v2384_v25 = vpack.c.bf16 %v318_v11, %v317_v10 }
  0xa2   :  { %2323 = vmatpush3.bf16.msra.mxu0 %v2322_v45  ;;  %1108 = vmatprep.mubr.f32.mxu0 %v629_v27  ;;  %v2340_v43 = vpack.c.bf16 %v264_v38, %v263_v37  ;;  %v248_v45 = vld [vmem:[#allocation5 + $0x458] sm:$0xff]  ;;  %v2416_v27 = vpack.c.bf16 %v350_v15, %v349_v14  ;;  %v630_v34 = vcombine.low %v2931_v23, %v2934_v24  ;;  %v322_v23 = vld [vmem:[#allocation5 + $0x6a8] sm:$0xff]  ;;  %v309_v14 = vld [vmem:[#allocation5 + $0x640] sm:$0xff] }
  0xa3   :  { %1039 = vmatmul.mubr.f32.vlgmr.msra.gmra.mrb[2].mxu1 %v594_v46  ;;  %2325 = vmatprep.subr.bf16.mxu0 %v2324_v48  ;;  %v279_v46 = vld [vmem:[#allocation5 + $0x550] sm:$0xff]  ;;  %v280_v48 = vld [vmem:[#allocation5 + $0x558] sm:$0xff]  ;;  %v2342_v54 = vpack.c.bf16 %v248_v45, %v247_v44  ;;  %v321_v44 = vld [vmem:[#allocation5 + $0x6a0] sm:$0xff] }
  0xa4   :  { %2355 = vmatpush3.bf16.msra.mxu1 %v2354_v47  ;;  %1178 = vmatprep.mubr.f32.mxu1 %v631_v29  ;;  %v2372_v47 = vpack.c.bf16 %v296_v40, %v295_v39  ;;  %v2374_v55 = vpack.c.bf16 %v280_v48, %v279_v46  ;;  %v320_v26 = vld [vmem:[#allocation5 + $0x698] sm:$0xff]  ;;  %v628_v29 = vcombine.low %v2925_v9, %v2928_v17  ;;  %v303_v40 = vld [vmem:[#allocation5 + $0x610] sm:$0xff]  ;;  %v353_v46 = vld [vmem:[#allocation5 + $0x7a0] sm:$0xff] }
  0xa5   :  { %2357 = vmatprep.subr.bf16.mxu1 %v2356_v53  ;;  %v298_v53 = vld [vmem:[#allocation5 + $0x5e8] sm:$0xff]  ;;  %v2388_v39 = vpack.c.bf16 %v320_v26, %v319_v20  ;;  %v335_v9 = vld [vmem:[#allocation5 + $0x710] sm:$0xff]  ;;  %v340_v5 = vld [vmem:[#allocation5 + $0x738] sm:$0xff] }
  0xa6   :  { %2327 = vmatpush3.bf16.msra.mxu0 %v2326_v60  ;;  %v2376_v59 = vpack.c.bf16 %v298_v53, %v297_v51  ;;  %v282_v60 = vld [vmem:[#allocation5 + $0x568] sm:$0xff]  ;;  %v2392_v53 = vpack.c.bf16 %v322_v23, %v321_v44  ;;  %v327_v20 = vld [vmem:[#allocation5 + $0x6d0] sm:$0xff]  ;;  %v360_v26 = vld [vmem:[#allocation5 + $0x7d8] sm:$0xff] }
  0xa7   :  { %2329 = vmatprep.subr.bf16.mxu0 %v2328_v1  ;;  %v2346_v1 = vpack.c.bf16 %v250_v57, %v249_v52  ;;  %v2378_v2 = vpack.c.bf16 %v282_v60, %v281_v58  ;;  %v2636_v32 = vld [vmem:[#allocation2 + $0x78] ss:$48 sps:$4 sm:$0xff]   ;;  %v2638_v36 = vld [vmem:[#allocation2 + $0x1c] ss:$48 sps:$4 sm:$0xff]   ;;  %v323_v58 = vld [vmem:[#allocation5 + $0x6b0] sm:$0xff] }
  0xa8   :  { %2359 = vmatpush3.bf16.msra.mxu1 %v2358_v0  ;;  %v300_v0 = vld [vmem:[#allocation5 + $0x5f8] sm:$0xff]  ;;  %v2948_v17 = vrot.slane %v2636_v32, %v2898_v21  ;;  %v2951_v24 = vrot.slane %v2638_v36, %v2898_v21  ;;  %v338_v57 = vld [vmem:[#allocation5 + $0x728] sm:$0xff]  ;;  %v355_v60 = vld [vmem:[#allocation5 + $0x7b0] sm:$0xff] }
  0xa9   :  { %2361 = vmatprep.subr.bf16.mxu1 %v2360_v3  ;;  %v2348_v3 = vpack.c.bf16 %v268_v62, %v267_v61  ;;  %v2380_v7 = vpack.c.bf16 %v300_v0, %v299_v63  ;;  %v2639_v37 = vld [vmem:[#allocation2 + $0x7c] ss:$48 sps:$4 sm:$0xff]   ;;  %v343_v32 = vld [vmem:[#allocation5 + $0x750] sm:$0xff]  ;;  %v329_v36 = vld [vmem:[#allocation5 + $0x6e0] sm:$0xff] }
  0xaa   :  { %2331 = vmatpush3.bf16.msra.mxu0 %v2330_v8  ;;  %v284_v8 = vld [vmem:[#allocation5 + $0x578] sm:$0xff]  ;;  %v2954_v45 = vrot.slane %v2639_v37, %v2898_v21  ;;  %v358_v10 = vld [vmem:[#allocation5 + $0x7c8] sm:$0xff] }
  0xab   :  { %2333 = vmatprep.subr.bf16.mxu0 %v2332_v13  ;;  %v302_v13 = vld [vmem:[#allocation5 + $0x608] sm:$0xff]  ;;  %v2382_v22 = vpack.c.bf16 %v284_v8, %v283_v6  ;;  %v356_v61 = vld [vmem:[#allocation5 + $0x7b8] sm:$0xff]  ;;  %v325_v6 = vld [vmem:[#allocation5 + $0x6c0] sm:$0xff] }
  0xac   :  { %2363 = vmatpush3.bf16.msra.mxu1 %v2362_v12  ;;  %v301_v12 = vld [vmem:[#allocation5 + $0x600] sm:$0xff]  ;;  %v667_v50 = vcombine.high %v2951_v24, %v2954_v45  ;;  %v2428_v4 = vpack.c.bf16 %v356_v61, %v355_v60  ;;  %v310_v15 = vld [vmem:[#allocation5 + $0x648] sm:$0xff] }
  0xad   :  { %2365 = vmatprep.subr.bf16.mxu1 %v2364_v18  ;;  %v333_v18 = vld [vmem:[#allocation5 + $0x700] sm:$0xff]  ;;  %v2386_v33 = vpack.c.bf16 %v302_v13, %v301_v12  ;;  %v330_v37 = vld [vmem:[#allocation5 + $0x6e8] sm:$0xff] }
  0xae   :  { %2335 = vmatpush3.bf16.msra.mxu0 %v2334_v28  ;;  %v2634_v28 = vld [vmem:[#allocation2 + $0x18] ss:$48 sps:$4 sm:$0xff]   ;;  %v2418_v38 = vpack.c.bf16 %v334_v19, %v333_v18  ;;  %v357_v8 = vld [vmem:[#allocation5 + $0x7c0] sm:$0xff]  ;;  %v2408_v23 = vpack.c.bf16 %v330_v37, %v329_v36 }
  0xaf   :  { %2337 = vmatprep.subr.bf16.mxu0 %v2336_v31  ;;  %v352_v31 = vld [vmem:[#allocation5 + $0x798] sm:$0xff]  ;;  %v2432_v18 = vpack.c.bf16 %v358_v10, %v357_v8  ;;  %v342_v19 = vld [vmem:[#allocation5 + $0x748] sm:$0xff]  ;;  %v413_v61 = vld [vmem:[#allocation5 + $0x980] sm:$0xff] }
  0xb0   :  { %2367 = vmatpush3.bf16.msra.mxu1 %v2366_v30  ;;  %v351_v30 = vld [vmem:[#allocation5 + $0x790] sm:$0xff]  ;;  %v397_v8 = vld [vmem:[#allocation5 + $0x900] sm:$0xff]  ;;  %v418_v37 = vld [vmem:[#allocation5 + $0x9a8] sm:$0xff] }
  0xb1   :  { %2369 = vmatprep.subr.bf16.mxu1 %v2368_v35  ;;  %v2945_v35 = vrot.slane %v2634_v28, %v2898_v21  ;;  %v417_v36 = vld [vmem:[#allocation5 + $0x9a0] sm:$0xff] }
  0xb2   :  { %2339 = vmatpush3.bf16.msra.mxu0 %v2338_v41  ;;  %v304_v41 = vld [vmem:[#allocation5 + $0x618] sm:$0xff] }
  0xb3   :  { %2341 = vmatprep.subr.bf16.mxu0 %v2340_v43  ;;  %v336_v43 = vld [vmem:[#allocation5 + $0x718] sm:$0xff]  ;;  %v665_v48 = vcombine.high %v2945_v35, %v2948_v17  ;;  %v2390_v49 = vpack.c.bf16 %v304_v41, %v303_v40  ;;  %v362_v40 = vld [vmem:[#allocation5 + $0x7e8] sm:$0xff] }
  0xb4   :  { %2371 = vmatpush3.bf16.msra.mxu1 %v2370_v42  ;;  %v2420_v42 = vpack.c.bf16 %v352_v31, %v351_v30  ;;  %v2422_v51 = vpack.c.bf16 %v336_v43, %v335_v9  ;;  %v311_v30 = vld [vmem:[#allocation5 + $0x650] sm:$0xff]  ;;  %v312_v31 = vld [vmem:[#allocation5 + $0x658] sm:$0xff]  ;;  %v314_v9 = vld [vmem:[#allocation5 + $0x668] sm:$0xff] }
  0xb5   :  { %2373 = vmatprep.subr.bf16.mxu1 %v2372_v47  ;;  %v354_v47 = vld [vmem:[#allocation5 + $0x7a8] sm:$0xff]  ;;  %v2406_v41 = vpack.c.bf16 %v312_v31, %v311_v30  ;;  %v368_v30 = vld [vmem:[#allocation5 + $0x818] sm:$0xff] }
  0xb6   :  { %2343 = vmatpush3.bf16.msra.mxu0 %v2342_v54  ;;  %v305_v54 = vld [vmem:[#allocation5 + $0x620] sm:$0xff]  ;;  %v2424_v52 = vpack.c.bf16 %v354_v47, %v353_v46  ;;  %v346_v43 = vld [vmem:[#allocation5 + $0x768] sm:$0xff]  ;;  %v331_v46 = vld [vmem:[#allocation5 + $0x6f0] sm:$0xff] }
  0xb7   :  { %2345 = vmatprep.subr.bf16.mxu0 %v2344_v56  ;;  %v337_v56 = vld [vmem:[#allocation5 + $0x720] sm:$0xff]  ;;  %v400_v31 = vld [vmem:[#allocation5 + $0x918] sm:$0xff] }
  0xb8   :  { %2375 = vmatpush3.bf16.msra.mxu1 %v2374_v55  ;;  %v306_v55 = vld [vmem:[#allocation5 + $0x628] sm:$0xff]  ;;  %v2426_v63 = vpack.c.bf16 %v338_v57, %v337_v56  ;;  %v348_v57 = vld [vmem:[#allocation5 + $0x778] sm:$0xff] }
  0xb9   :  { %2377 = vmatprep.subr.bf16.mxu1 %v2376_v59  ;;  %v324_v59 = vld [vmem:[#allocation5 + $0x6b8] sm:$0xff]  ;;  %v2394_v62 = vpack.c.bf16 %v306_v55, %v305_v54  ;;  %v347_v55 = vld [vmem:[#allocation5 + $0x770] sm:$0xff] }
  0xba   :  { %2347 = vmatpush3.bf16.msra.mxu0 %v2346_v1  ;;  %v2396_v0 = vpack.c.bf16 %v324_v59, %v323_v58  ;;  %v307_v1 = vld [vmem:[#allocation5 + $0x630] sm:$0xff]  ;;  %v316_v54 = vld [vmem:[#allocation5 + $0x678] sm:$0xff]  ;;  %v381_v58 = vld [vmem:[#allocation5 + $0x880] sm:$0xff] }
  0xbb   :  { %2349 = vmatprep.subr.bf16.mxu0 %v2348_v3  ;;  %v339_v3 = vld [vmem:[#allocation5 + $0x730] sm:$0xff]  ;;  %v382_v59 = vld [vmem:[#allocation5 + $0x888] sm:$0xff] }
  0xbc   :  { %2379 = vmatpush3.bf16.msra.mxu1 %v2378_v2  ;;  %v308_v2 = vld [vmem:[#allocation5 + $0x638] sm:$0xff]  ;;  %v2430_v12 = vpack.c.bf16 %v340_v5, %v339_v3  ;;  %v2448_v5 = vpack.c.bf16 %v382_v59, %v381_v58  ;;  %v373_v58 = vld [vmem:[#allocation5 + $0x840] sm:$0xff] }
  0xbd   :  { %2381 = vmatprep.subr.bf16.mxu1 %v2380_v7  ;;  %v326_v7 = vld [vmem:[#allocation5 + $0x6c8] sm:$0xff]  ;;  %v2398_v11 = vpack.c.bf16 %v308_v2, %v307_v1  ;;  %v2644_v1 = vld [vmem:[#allocation2 + $0x24] ss:$48 sps:$4 sm:$0xff]  }
  0xbe   :  { %2351 = vmatpush3.bf16.msra.mxu0 %v2350_v16  ;;  %v2400_v13 = vpack.c.bf16 %v326_v7, %v325_v6  ;;  %v341_v16 = vld [vmem:[#allocation5 + $0x740] sm:$0xff]  ;;  %v366_v7 = vld [vmem:[#allocation5 + $0x808] sm:$0xff] }
  0xbf   :  { %2385 = vmatprep.subr.bf16.mxu0 %v2384_v25  ;;  %v359_v25 = vld [vmem:[#allocation5 + $0x7d0] sm:$0xff]  ;;  %v2434_v28 = vpack.c.bf16 %v342_v19, %v341_v16  ;;  %v365_v6 = vld [vmem:[#allocation5 + $0x800] sm:$0xff]  ;;  %v664_v16 = vcombine.low %v2945_v35, %v2948_v17  ;;  %v416_v19 = vld [vmem:[#allocation5 + $0x998] sm:$0xff] }
  0xc0   :  { %2383 = vmatpush3.bf16.msra.mxu1 %v2382_v22  ;;  %v328_v22 = vld [vmem:[#allocation5 + $0x6d8] sm:$0xff]  ;;  %v2645_v2 = vld [vmem:[#allocation2 + $0x84] ss:$48 sps:$4 sm:$0xff]  }
  0xc1   :  { %2417 = vmatprep.subr.bf16.mxu1 %v2416_v27  ;;  %1109 = vmatmul.mubr.f32.vlgmr.msra.gmra.mrb[4].mxu0 %v628_v29  ;;  %v2402_v27 = vpack.c.bf16 %v310_v15, %v309_v14  ;;  %v2404_v29 = vpack.c.bf16 %v328_v22, %v327_v20  ;;  %v2969_v20 = vrot.slane %v2644_v1, %v2898_v21  ;;  %v399_v35 = vld [vmem:[#allocation5 + $0x910] sm:$0xff]  ;;  %v421_v59 = vld [vmem:[#allocation5 + $0x9c0] sm:$0xff] }
  0xc2   :  { %2387 = vmatpush3.bf16.msra.mxu0 %v2386_v33  ;;  %1248 = vmatprep.mubr.f32.mxu0 %v665_v48  ;;  %v2436_v33 = vpack.c.bf16 %v360_v26, %v359_v25  ;;  %v332_v48 = vld [vmem:[#allocation5 + $0x6f8] sm:$0xff]  ;;  %v2972_v22 = vrot.slane %v2645_v2, %v2898_v21  ;;  %v2450_v25 = vpack.c.bf16 %v366_v7, %v365_v6  ;;  %v423_v6 = vld [vmem:[#allocation5 + $0x9d0] sm:$0xff] }
  0xc3   :  { %1179 = vmatmul.mubr.f32.vlgmr.msra.gmra.mrb[4].mxu1 %v630_v34  ;;  %2389 = vmatprep.subr.bf16.mxu0 %v2388_v39  ;;  %v344_v34 = vld [vmem:[#allocation5 + $0x758] sm:$0xff]  ;;  %v361_v39 = vld [vmem:[#allocation5 + $0x7e0] sm:$0xff]  ;;  %v666_v26 = vcombine.low %v2951_v24, %v2954_v45 }
  0xc4   :  { %2419 = vmatpush3.bf16.msra.mxu1 %v2418_v38  ;;  %1318 = vmatprep.mubr.f32.mxu1 %v667_v50  ;;  %v313_v38 = vld [vmem:[#allocation5 + $0x660] sm:$0xff]  ;;  %v2438_v44 = vpack.c.bf16 %v344_v34, %v343_v32  ;;  %v2440_v47 = vpack.c.bf16 %v362_v40, %v361_v39  ;;  %v364_v50 = vld [vmem:[#allocation5 + $0x7f8] sm:$0xff]  ;;  %v703_v24 = vcombine.high %v2969_v20, %v2972_v22 }
  0xc5   :  { %2421 = vmatprep.subr.bf16.mxu1 %v2420_v42  ;;  %v345_v42 = vld [vmem:[#allocation5 + $0x760] sm:$0xff]  ;;  %v424_v7 = vld [vmem:[#allocation5 + $0x9d8] sm:$0xff] }
  0xc6   :  { %2391 = vmatpush3.bf16.msra.mxu0 %v2390_v49  ;;  %v363_v49 = vld [vmem:[#allocation5 + $0x7f0] sm:$0xff]  ;;  %v2442_v56 = vpack.c.bf16 %v346_v43, %v345_v42  ;;  %v385_v32 = vld [vmem:[#allocation5 + $0x8a0] sm:$0xff]  ;;  %v2488_v42 = vpack.c.bf16 %v418_v37, %v417_v36  ;;  %v402_v43 = vld [vmem:[#allocation5 + $0x928] sm:$0xff] }
  0xc7   :  { %2393 = vmatprep.subr.bf16.mxu0 %v2392_v53  ;;  %v315_v53 = vld [vmem:[#allocation5 + $0x670] sm:$0xff]  ;;  %v2444_v60 = vpack.c.bf16 %v364_v50, %v363_v49  ;;  %v369_v40 = vld [vmem:[#allocation5 + $0x820] sm:$0xff]  ;;  %v396_v37 = vld [vmem:[#allocation5 + $0x8f8] sm:$0xff] }
  0xc8   :  { %2423 = vmatpush3.bf16.msra.mxu1 %v2422_v51  ;;  %v2410_v51 = vpack.c.bf16 %v314_v9, %v313_v38  ;;  %v2414_v3 = vpack.c.bf16 %v316_v54, %v315_v53  ;;  %v2486_v38 = vpack.c.bf16 %v400_v31, %v399_v35  ;;  %v401_v9 = vld [vmem:[#allocation5 + $0x920] sm:$0xff]  ;;  %v372_v53 = vld [vmem:[#allocation5 + $0x838] sm:$0xff]  ;;  %v403_v54 = vld [vmem:[#allocation5 + $0x930] sm:$0xff] }
  0xc9   :  { %2425 = vmatprep.subr.bf16.mxu1 %v2424_v52  ;;  %v2412_v52 = vpack.c.bf16 %v332_v48, %v331_v46  ;;  %v419_v46 = vld [vmem:[#allocation5 + $0x9b0] sm:$0xff]  ;;  %v2490_v49 = vpack.c.bf16 %v402_v43, %v401_v9  ;;  %v378_v31 = vld [vmem:[#allocation5 + $0x868] sm:$0xff]  ;;  %v412_v43 = vld [vmem:[#allocation5 + $0x978] sm:$0xff] }
  0xca   :  { %2395 = vmatpush3.bf16.msra.mxu0 %v2394_v62  ;;  %v2640_v62 = vld [vmem:[#allocation2 + $0x20] ss:$48 sps:$4 sm:$0xff]  }
  0xcb   :  { %2397 = vmatprep.subr.bf16.mxu0 %v2396_v0  ;;  %v414_v0 = vld [vmem:[#allocation5 + $0x988] sm:$0xff]  ;;  %v2961_v14 = vrot.slane %v2640_v62, %v2898_v21  ;;  %v395_v36 = vld [vmem:[#allocation5 + $0x8f0] sm:$0xff] }
  0xcc   :  { %2427 = vmatpush3.bf16.msra.mxu1 %v2426_v63  ;;  %v2642_v63 = vld [vmem:[#allocation2 + $0x80] ss:$48 sps:$4 sm:$0xff]   ;;  %v2480_v10 = vpack.c.bf16 %v414_v0, %v413_v61  ;;  %v374_v62 = vld [vmem:[#allocation5 + $0x848] sm:$0xff] }
  0xcd   :  { %2429 = vmatprep.subr.bf16.mxu1 %v2428_v4  ;;  %v2446_v4 = vpack.c.bf16 %v348_v57, %v347_v55  ;;  %v2964_v15 = vrot.slane %v2642_v63, %v2898_v21  ;;  %v390_v57 = vld [vmem:[#allocation5 + $0x8c8] sm:$0xff]  ;;  %v405_v63 = vld [vmem:[#allocation5 + $0x940] sm:$0xff] }
  0xce   :  { %2399 = vmatpush3.bf16.msra.mxu0 %v2398_v11  ;;  %v398_v11 = vld [vmem:[#allocation5 + $0x908] sm:$0xff] }
  0xcf   :  { %2401 = vmatprep.subr.bf16.mxu0 %v2400_v13  ;;  %v384_v13 = vld [vmem:[#allocation5 + $0x898] sm:$0xff]  ;;  %v701_v34 = vcombine.high %v2961_v14, %v2964_v15  ;;  %v406_v0 = vld [vmem:[#allocation5 + $0x948] sm:$0xff] }
  0xd0   :  { %2431 = vmatpush3.bf16.msra.mxu1 %v2430_v12  ;;  %v383_v12 = vld [vmem:[#allocation5 + $0x890] sm:$0xff] }
  0xd1   :  { %2433 = vmatprep.subr.bf16.mxu1 %v2432_v18  ;;  %v415_v18 = vld [vmem:[#allocation5 + $0x990] sm:$0xff] }
  0xd2   :  { %2403 = vmatpush3.bf16.msra.mxu0 %v2402_v27  ;;  %v2482_v27 = vpack.c.bf16 %v398_v11, %v397_v8  ;;  %v2484_v17 = vpack.c.bf16 %v416_v19, %v415_v18  ;;  %v2466_v8 = vpack.c.bf16 %v374_v62, %v373_v58  ;;  %v2500_v18 = vpack.c.bf16 %v424_v7, %v423_v6  ;;  %v408_v19 = vld [vmem:[#allocation5 + $0x958] sm:$0xff]  ;;  %v461_v58 = vld [vmem:[#allocation5 + $0xb00] sm:$0xff] }
  0xd3   :  { %2405 = vmatprep.subr.bf16.mxu0 %v2404_v29  ;;  %v367_v29 = vld [vmem:[#allocation5 + $0x810] sm:$0xff]  ;;  %v448_v62 = vld [vmem:[#allocation5 + $0xa98] sm:$0xff]  ;;  %v702_v7 = vcombine.low %v2969_v20, %v2972_v22 }
  0xd4   :  { %2435 = vmatpush3.bf16.msra.mxu1 %v2434_v28  ;;  %v2452_v28 = vpack.c.bf16 %v384_v13, %v383_v12  ;;  %v2454_v45 = vpack.c.bf16 %v368_v30, %v367_v29  ;;  %v375_v12 = vld [vmem:[#allocation5 + $0x850] sm:$0xff]  ;;  %v376_v13 = vld [vmem:[#allocation5 + $0x858] sm:$0xff] }
  0xd5   :  { %2437 = vmatprep.subr.bf16.mxu1 %v2436_v33  ;;  %v386_v33 = vld [vmem:[#allocation5 + $0x8a8] sm:$0xff]  ;;  %v2470_v29 = vpack.c.bf16 %v376_v13, %v375_v12  ;;  %v432_v12 = vld [vmem:[#allocation5 + $0xa18] sm:$0xff] }
  0xd6   :  { %2407 = vmatpush3.bf16.msra.mxu0 %v2406_v41  ;;  %v2456_v39 = vpack.c.bf16 %v386_v33, %v385_v32  ;;  %v370_v41 = vld [vmem:[#allocation5 + $0x828] sm:$0xff]  ;;  %v409_v32 = vld [vmem:[#allocation5 + $0x960] sm:$0xff]  ;;  %v464_v13 = vld [vmem:[#allocation5 + $0xb18] sm:$0xff] }
  0xd7   :  { %2409 = vmatprep.subr.bf16.mxu0 %v2408_v23  ;;  %v388_v23 = vld [vmem:[#allocation5 + $0x8b8] sm:$0xff]  ;;  %v2458_v48 = vpack.c.bf16 %v370_v41, %v369_v40  ;;  %v411_v41 = vld [vmem:[#allocation5 + $0x970] sm:$0xff] }
  0xd8   :  { %2439 = vmatpush3.bf16.msra.mxu1 %v2438_v44  ;;  %v387_v44 = vld [vmem:[#allocation5 + $0x8b0] sm:$0xff]  ;;  %v380_v40 = vld [vmem:[#allocation5 + $0x878] sm:$0xff] }
  0xd9   :  { %2441 = vmatprep.subr.bf16.mxu1 %v2440_v47  ;;  %v420_v47 = vld [vmem:[#allocation5 + $0x9b8] sm:$0xff]  ;;  %v2460_v50 = vpack.c.bf16 %v388_v23, %v387_v44  ;;  %v445_v44 = vld [vmem:[#allocation5 + $0xa80] sm:$0xff]  ;;  %v446_v23 = vld [vmem:[#allocation5 + $0xa88] sm:$0xff] }
  0xda   :  { %2411 = vmatpush3.bf16.msra.mxu0 %v2410_v51  ;;  %v371_v51 = vld [vmem:[#allocation5 + $0x830] sm:$0xff]  ;;  %v2492_v55 = vpack.c.bf16 %v420_v47, %v419_v46  ;;  %v477_v47 = vld [vmem:[#allocation5 + $0xb80] sm:$0xff] }
  0xdb   :  { %2413 = vmatprep.subr.bf16.mxu0 %v2412_v52  ;;  %v389_v52 = vld [vmem:[#allocation5 + $0x8c0] sm:$0xff]  ;;  %v2462_v61 = vpack.c.bf16 %v372_v53, %v371_v51  ;;  %v2650_v51 = vld [vmem:[#allocation2 + $0x2c] ss:$48 sps:$4 sm:$0xff]  }
  0xdc   :  { %2443 = vmatpush3.bf16.msra.mxu1 %v2442_v56  ;;  %v404_v56 = vld [vmem:[#allocation5 + $0x938] sm:$0xff]  ;;  %v2464_v2 = vpack.c.bf16 %v390_v57, %v389_v52  ;;  %v429_v52 = vld [vmem:[#allocation5 + $0xa00] sm:$0xff]  ;;  %v430_v57 = vld [vmem:[#allocation5 + $0xa08] sm:$0xff] }
  0xdd   :  { %2445 = vmatprep.subr.bf16.mxu1 %v2444_v60  ;;  %v422_v60 = vld [vmem:[#allocation5 + $0x9c8] sm:$0xff]  ;;  %v2494_v1 = vpack.c.bf16 %v404_v56, %v403_v54  ;;  %v2512_v56 = vpack.c.bf16 %v446_v23, %v445_v44  ;;  %v2514_v6 = vpack.c.bf16 %v430_v57, %v429_v52  ;;  %v488_v52 = vld [vmem:[#allocation5 + $0xbd8] sm:$0xff] }
  0xde   :  { %2415 = vmatpush3.bf16.msra.mxu0 %v2414_v3  ;;  %v391_v3 = vld [vmem:[#allocation5 + $0x8d0] sm:$0xff]  ;;  %v2651_v53 = vld [vmem:[#allocation2 + $0x8c] ss:$48 sps:$4 sm:$0xff]  }
  0xdf   :  { %2449 = vmatprep.subr.bf16.mxu0 %v2448_v5  ;;  %v392_v5 = vld [vmem:[#allocation5 + $0x8d8] sm:$0xff]  ;;  %v486_v44 = vld [vmem:[#allocation5 + $0xbc8] sm:$0xff] }
  0xe0   :  { %2447 = vmatpush3.bf16.msra.mxu1 %v2446_v4  ;;  %v2496_v4 = vpack.c.bf16 %v422_v60, %v421_v59  ;;  %v2468_v11 = vpack.c.bf16 %v392_v5, %v391_v3  ;;  %v462_v60 = vld [vmem:[#allocation5 + $0xb08] sm:$0xff]  ;;  %v480_v3 = vld [vmem:[#allocation5 + $0xb98] sm:$0xff]  ;;  %v2992_v5 = vrot.slane %v2651_v53, %v2898_v21 }
  0xe1   :  { %2481 = vmatprep.subr.bf16.mxu1 %v2480_v10  ;;  %1249 = vmatmul.mubr.f32.vlgmr.msra.gmra.mrb[6].mxu0 %v664_v16  ;;  %v2498_v10 = vpack.c.bf16 %v406_v0, %v405_v63  ;;  %v407_v16 = vld [vmem:[#allocation5 + $0x950] sm:$0xff]  ;;  %v470_v53 = vld [vmem:[#allocation5 + $0xb48] sm:$0xff] }
  0xe2   :  { %2451 = vmatpush3.bf16.msra.mxu0 %v2450_v25  ;;  %1388 = vmatprep.mubr.f32.mxu0 %v701_v34  ;;  %v393_v25 = vld [vmem:[#allocation5 + $0x8e0] sm:$0xff]  ;;  %v2502_v30 = vpack.c.bf16 %v408_v19, %v407_v16  ;;  %v410_v34 = vld [vmem:[#allocation5 + $0x968] sm:$0xff] }
  0xe3   :  { %1319 = vmatmul.mubr.f32.vlgmr.msra.gmra.mrb[6].mxu1 %v666_v26  ;;  %2453 = vmatprep.subr.bf16.mxu0 %v2452_v28  ;;  %v394_v26 = vld [vmem:[#allocation5 + $0x8e8] sm:$0xff]  ;;  %v2506_v9 = vpack.c.bf16 %v410_v34, %v409_v32  ;;  %v449_v16 = vld [vmem:[#allocation5 + $0xaa0] sm:$0xff]  ;;  %v452_v32 = vld [vmem:[#allocation5 + $0xab8] sm:$0xff] }
  0xe4   :  { %2483 = vmatpush3.bf16.msra.mxu1 %v2482_v27  ;;  %1458 = vmatprep.mubr.f32.mxu1 %v703_v24  ;;  %v425_v27 = vld [vmem:[#allocation5 + $0x9e0] sm:$0xff]  ;;  %v426_v28 = vld [vmem:[#allocation5 + $0x9e8] sm:$0xff]  ;;  %v2472_v35 = vpack.c.bf16 %v394_v26, %v393_v25  ;;  %v427_v24 = vld [vmem:[#allocation5 + $0x9f0] sm:$0xff] }
  0xe5   :  { %2485 = vmatprep.subr.bf16.mxu1 %v2484_v17  ;;  %v377_v17 = vld [vmem:[#allocation5 + $0x860] sm:$0xff]  ;;  %v2504_v33 = vpack.c.bf16 %v426_v28, %v425_v27  ;;  %v482_v25 = vld [vmem:[#allocation5 + $0xba8] sm:$0xff]  ;;  %v484_v34 = vld [vmem:[#allocation5 + $0xbb8] sm:$0xff] }
  0xe6   :  { %2455 = vmatpush3.bf16.msra.mxu0 %v2454_v45  ;;  %v428_v45 = vld [vmem:[#allocation5 + $0x9f8] sm:$0xff]  ;;  %v481_v19 = vld [vmem:[#allocation5 + $0xba0] sm:$0xff] }
  0xe7   :  { %2457 = vmatprep.subr.bf16.mxu0 %v2456_v39  ;;  %v379_v39 = vld [vmem:[#allocation5 + $0x870] sm:$0xff]  ;;  %v2508_v46 = vpack.c.bf16 %v428_v45, %v427_v24  ;;  %v433_v28 = vld [vmem:[#allocation5 + $0xa20] sm:$0xff] }
  0xe8   :  { %2487 = vmatpush3.bf16.msra.mxu1 %v2486_v38  ;;  %v2474_v38 = vpack.c.bf16 %v378_v31, %v377_v17  ;;  %v2478_v54 = vpack.c.bf16 %v380_v40, %v379_v39  ;;  %v466_v17 = vld [vmem:[#allocation5 + $0xb28] sm:$0xff]  ;;  %v451_v31 = vld [vmem:[#allocation5 + $0xab0] sm:$0xff] }
  0xe9   :  { %2489 = vmatprep.subr.bf16.mxu1 %v2488_v42  ;;  %v2476_v42 = vpack.c.bf16 %v396_v37, %v395_v36  ;;  %v2524_v24 = vpack.c.bf16 %v452_v32, %v451_v31  ;;  %v435_v45 = vld [vmem:[#allocation5 + $0xa30] sm:$0xff] }
  0xea   :  { %2459 = vmatpush3.bf16.msra.mxu0 %v2458_v48  ;;  %v2646_v48 = vld [vmem:[#allocation2 + $0x28] ss:$48 sps:$4 sm:$0xff]   ;;  %v467_v39 = vld [vmem:[#allocation5 + $0xb30] sm:$0xff] }
  0xeb   :  { %2461 = vmatprep.subr.bf16.mxu0 %v2460_v50  ;;  %v478_v50 = vld [vmem:[#allocation5 + $0xb88] sm:$0xff]  ;;  %v2981_v63 = vrot.slane %v2646_v48, %v2898_v21  ;;  %v437_v48 = vld [vmem:[#allocation5 + $0xa40] sm:$0xff] }
  0xec   :  { %2491 = vmatpush3.bf16.msra.mxu1 %v2490_v49  ;;  %v2648_v49 = vld [vmem:[#allocation2 + $0x88] ss:$48 sps:$4 sm:$0xff]   ;;  %v2544_v59 = vpack.c.bf16 %v478_v50, %v477_v47  ;;  %v469_v50 = vld [vmem:[#allocation5 + $0xb40] sm:$0xff] }
  0xed   :  { %2493 = vmatprep.subr.bf16.mxu1 %v2492_v55  ;;  %v2510_v55 = vpack.c.bf16 %v412_v43, %v411_v41  ;;  %v2984_v0 = vrot.slane %v2648_v49, %v2898_v21  ;;  %v468_v41 = vld [vmem:[#allocation5 + $0xb38] sm:$0xff]  ;;  %v485_v43 = vld [vmem:[#allocation5 + $0xbc0] sm:$0xff]  ;;  %v438_v49 = vld [vmem:[#allocation5 + $0xa48] sm:$0xff] }
  0xee   :  { %2463 = vmatpush3.bf16.msra.mxu0 %v2462_v61  ;;  %v447_v61 = vld [vmem:[#allocation5 + $0xa90] sm:$0xff]  ;;  %v2530_v57 = vpack.c.bf16 %v438_v49, %v437_v48  ;;  %v1612_v49 = vld [vmem:[#allocation8 + $0x38] sm:$0xff] }
  0xef   :  { %2465 = vmatprep.subr.bf16.mxu0 %v2464_v2  ;;  %v479_v2 = vld [vmem:[#allocation5 + $0xb90] sm:$0xff] }
  0xf0   :  { %2495 = vmatpush3.bf16.msra.mxu1 %v2494_v1  ;;  %v700_v1 = vcombine.low %v2961_v14, %v2964_v15  ;;  %v463_v14 = vld [vmem:[#allocation5 + $0xb10] sm:$0xff]  ;;  %v2548_v15 = vpack.c.bf16 %v480_v3, %v479_v2  ;;  %v472_v2 = vld [vmem:[#allocation5 + $0xb58] sm:$0xff]  ;;  %v457_v3 = vld [vmem:[#allocation5 + $0xae0] sm:$0xff] }
  0xf1   :  { %2497 = vmatprep.subr.bf16.mxu1 %v2496_v4  ;;  %v2989_v4 = vrot.slane %v2650_v51, %v2898_v21  ;;  %v737_v21 = vcombine.high %v2981_v63, %v2984_v0  ;;  %v2550_v26 = vpack.c.bf16 %v464_v13, %v463_v14  ;;  %v2560_v51 = vpack.c.bf16 %v486_v44, %v485_v43  ;;  %v441_v14 = vld [vmem:[#allocation5 + $0xa60] sm:$0xff]  ;;  %v1606_v43 = vld [vmem:[#allocation8 + $0x8] sm:$0xff]  ;;  %v1607_v44 = vld [vmem:[#allocation8 + $0x10] sm:$0xff] }
  0xf2   :  { %2467 = vmatpush3.bf16.msra.mxu0 %v2466_v8  ;;  %v2546_v8 = vpack.c.bf16 %v462_v60, %v461_v58  ;;  %v2562_v58 = vpack.c.bf16 %v470_v53, %v469_v50  ;;  %v439_v60 = vld [vmem:[#allocation5 + $0xa50] sm:$0xff]  ;;  %v473_v13 = vld [vmem:[#allocation5 + $0xb60] sm:$0xff] }
  0xf3   :  { %2469 = vmatprep.subr.bf16.mxu0 %v2468_v11  ;;  %v431_v11 = vld [vmem:[#allocation5 + $0xa10] sm:$0xff]  ;;  %v739_v20 = vcombine.high %v2989_v4, %v2992_v5 }
  0xf4   :  { %2499 = vmatpush3.bf16.msra.mxu1 %v2498_v10  ;;  %v2516_v10 = vpack.c.bf16 %v448_v62, %v447_v61  ;;  %v2518_v22 = vpack.c.bf16 %v432_v12, %v431_v11  ;;  %v440_v61 = vld [vmem:[#allocation5 + $0xa58] sm:$0xff]  ;;  %v471_v62 = vld [vmem:[#allocation5 + $0xb50] sm:$0xff] }
  0xf5   :  { %2501 = vmatprep.subr.bf16.mxu1 %v2500_v18  ;;  %v450_v18 = vld [vmem:[#allocation5 + $0xaa8] sm:$0xff]  ;;  %v2566_v11 = vpack.c.bf16 %v472_v2, %v471_v62  ;;  %v1611_v48 = vld [vmem:[#allocation8 + $0x30] sm:$0xff] }
  0xf6   :  { %2471 = vmatpush3.bf16.msra.mxu0 %v2470_v29  ;;  %v2520_v27 = vpack.c.bf16 %v450_v18, %v449_v16  ;;  %v434_v29 = vld [vmem:[#allocation5 + $0xa28] sm:$0xff]  ;;  %v2586_v50 = vpack.c.bf16 %v1612_v49, %v1611_v48 }
  0xf7   :  { %2473 = vmatprep.subr.bf16.mxu0 %v2472_v35  ;;  %v2552_v35 = vpack.c.bf16 %v482_v25, %v481_v19  ;;  %v2522_v36 = vpack.c.bf16 %v434_v29, %v433_v28  ;;  %v474_v18 = vld [vmem:[#allocation5 + $0xb68] sm:$0xff]  ;;  %v460_v19 = vld [vmem:[#allocation5 + $0xaf8] sm:$0xff]  ;;  %v491_v25 = vld [vmem:[#allocation5 + $0xbf0] sm:$0xff] }
  0xf8   :  { %2503 = vmatpush3.bf16.msra.mxu1 %v2502_v30  ;;  %v465_v30 = vld [vmem:[#allocation5 + $0xb20] sm:$0xff]  ;;  %v443_v28 = vld [vmem:[#allocation5 + $0xa70] sm:$0xff]  ;;  %v444_v29 = vld [vmem:[#allocation5 + $0xa78] sm:$0xff] }
  0xf9   :  { %2505 = vmatprep.subr.bf16.mxu1 %v2504_v33  ;;  %v483_v33 = vld [vmem:[#allocation5 + $0xbb0] sm:$0xff]  ;;  %v2554_v37 = vpack.c.bf16 %v466_v17, %v465_v30  ;;  %v476_v17 = vld [vmem:[#allocation5 + $0xb78] sm:$0xff]  ;;  %v2542_v31 = vpack.c.bf16 %v444_v29, %v443_v28 }
  0xfa   :  { %2475 = vmatpush3.bf16.msra.mxu0 %v2474_v38  ;;  %v436_v38 = vld [vmem:[#allocation5 + $0xa38] sm:$0xff]  ;;  %v2556_v40 = vpack.c.bf16 %v484_v34, %v483_v33  ;;  %v736_v33 = vcombine.low %v2981_v63, %v2984_v0  ;;  %v738_v34 = vcombine.low %v2989_v4, %v2992_v5  ;;  %v2802_v63 = vmov 0.0|0.0   ;;  %v1609_v5 = vld [vmem:[#allocation8 + $0x20] sm:$0xff]  ;;  %v1614_v53 = vld [vmem:[#allocation8 + $0x48] sm:$0xff] }
  0xfb   :  { %2477 = vmatprep.subr.bf16.mxu0 %v2476_v42  ;;  %v454_v42 = vld [vmem:[#allocation5 + $0xac8] sm:$0xff]  ;;  %v2526_v23 = vpack.c.bf16 %v436_v38, %v435_v45 }
  0xfc   :  { %2507 = vmatpush3.bf16.msra.mxu1 %v2506_v9  ;;  %v453_v9 = vld [vmem:[#allocation5 + $0xac0] sm:$0xff] }
  0xfd   :  { %2509 = vmatprep.subr.bf16.mxu1 %v2508_v46  ;;  %v2558_v46 = vpack.c.bf16 %v468_v41, %v467_v39  ;;  %v2528_v47 = vpack.c.bf16 %v454_v42, %v453_v9  ;;  %v1605_v42 = vld [vmem:[#allocation8] sm:$0xff] }
  0xfe   :  { %2479 = vmatpush3.bf16.msra.mxu0 %v2478_v54  ;;  %v455_v54 = vld [vmem:[#allocation5 + $0xad0] sm:$0xff]  ;;  %v2577_v0 = vpack.c.bf16 %v1606_v43, %v1605_v42 }
  0xff   :  { %2513 = vmatprep.subr.bf16.mxu0 %v2512_v56  ;;  %v487_v56 = vld [vmem:[#allocation5 + $0xbd0] sm:$0xff] }
 0x100   :  { %2511 = vmatpush3.bf16.msra.mxu1 %v2510_v55  ;;  %v456_v55 = vld [vmem:[#allocation5 + $0xad8] sm:$0xff] }
 0x101   :  { %2545 = vmatprep.subr.bf16.mxu1 %v2544_v59  ;;  %1389 = vmatmul.mubr.f32.vlgmr.msra.gmra.mrb[8].mxu0 %v700_v1  ;;  %v2532_v59 = vpack.c.bf16 %v456_v55, %v455_v54  ;;  %v2564_v1 = vpack.c.bf16 %v488_v52, %v487_v56  ;;  %v1615_v55 = vld [vmem:[#allocation8 + $0x50] sm:$0xff]  ;;  %v1616_v56 = vld [vmem:[#allocation8 + $0x58] sm:$0xff] }
 0x102   :  { %2515 = vmatpush3.bf16.msra.mxu0 %v2514_v6  ;;  %1528 = vmatprep.mubr.f32.mxu0 %v737_v21  ;;  %v458_v6 = vld [vmem:[#allocation5 + $0xae8] sm:$0xff]  ;;  %v459_v21 = vld [vmem:[#allocation5 + $0xaf0] sm:$0xff]  ;;  %v2592_v52 = vpack.c.bf16 %v1616_v56, %v1615_v55 }
 0x103   :  { %1459 = vmatmul.mubr.f32.vlgmr.msra.gmra.mrb[8].mxu1 %v702_v7  ;;  %2517 = vmatprep.subr.bf16.mxu0 %v2516_v10  ;;  %v489_v7 = vld [vmem:[#allocation5 + $0xbe0] sm:$0xff]  ;;  %v2534_v10 = vpack.c.bf16 %v440_v61, %v439_v60  ;;  %v2536_v12 = vpack.c.bf16 %v458_v6, %v457_v3 }
 0x104   :  { %2547 = vmatpush3.bf16.msra.mxu1 %v2546_v8  ;;  %1598 = vmatprep.mubr.f32.mxu1 %v739_v20  ;;  %v490_v8 = vld [vmem:[#allocation5 + $0xbe8] sm:$0xff]  ;;  %v492_v20 = vld [vmem:[#allocation5 + $0xbf8] sm:$0xff] }
 0x105   :  { %2549 = vmatprep.subr.bf16.mxu1 %v2548_v15  ;;  %v442_v15 = vld [vmem:[#allocation5 + $0xa68] sm:$0xff]  ;;  %v2568_v16 = vpack.c.bf16 %v490_v8, %v489_v7  ;;  %v2572_v30 = vpack.c.bf16 %v492_v20, %v491_v25  ;;  %v1619_v7 = vld [vmem:[#allocation8 + $0x70] sm:$0xff]  ;;  %v1620_v8 = vld [vmem:[#allocation8 + $0x78] sm:$0xff] }
 0x106   :  { %2519 = vmatpush3.bf16.msra.mxu0 %v2518_v22  ;;  %v2538_v22 = vpack.c.bf16 %v442_v15, %v441_v14 }
 0x107   :  { %2521 = vmatprep.subr.bf16.mxu0 %v2520_v27  ;;  %v2540_v27 = vpack.c.bf16 %v460_v19, %v459_v21 }
 0x108   :  { %2551 = vmatpush3.bf16.msra.mxu1 %v2550_v26  ;;  %v2570_v26 = vpack.c.bf16 %v474_v18, %v473_v13 }
 0x109   :  { %2553 = vmatprep.subr.bf16.mxu1 %v2552_v35  ;;  %v475_v35 = vld [vmem:[#allocation5 + $0xb70] sm:$0xff] }
 0x10a   :  { %2523 = vmatpush3.bf16.msra.mxu0 %v2522_v36  ;;  %v2574_v32 = vpack.c.bf16 %v476_v17, %v475_v35 }
 0x10b   :  { %2525 = vmatprep.subr.bf16.mxu0 %v2524_v24 }
 0x10c   :  { %2555 = vmatpush3.bf16.msra.mxu1 %v2554_v37  ;;  %v1718_v37 = vld [vmem:[#allocation7] ss:$0 sm:$0xff] }
 0x10d   :  { %2557 = vmatprep.subr.bf16.mxu1 %v2556_v40 }
 0x10e   :  { %2527 = vmatpush3.bf16.msra.mxu0 %v2526_v23  ;;  %v1608_v23 = vld [vmem:[#allocation8 + $0x18] sm:$0xff] }
 0x10f   :  { %2529 = vmatprep.subr.bf16.mxu0 %v2528_v47  ;;  %v2580_v4 = vpack.c.bf16 %v1608_v23, %v1607_v44 }
 0x110   :  { %2559 = vmatpush3.bf16.msra.mxu1 %v2558_v46  ;;  %v1610_v46 = vld [vmem:[#allocation8 + $0x28] sm:$0xff] }
 0x111   :  { %2561 = vmatprep.subr.bf16.mxu1 %v2560_v51  ;;  %v2583_v47 = vpack.c.bf16 %v1610_v46, %v1609_v5  ;;  %v1613_v51 = vld [vmem:[#allocation8 + $0x40] sm:$0xff] }
 0x112   :  { %2531 = vmatpush3.bf16.msra.mxu0 %v2530_v57  ;;  %v2589_v54 = vpack.c.bf16 %v1614_v53, %v1613_v51 }
 0x113   :  { %2533 = vmatprep.subr.bf16.mxu0 %v2532_v59  ;;  %v1618_v59 = vld [vmem:[#allocation8 + $0x68] sm:$0xff] }
 0x114   :  { %2563 = vmatpush3.bf16.msra.mxu1 %v2562_v58  ;;  %v1617_v58 = vld [vmem:[#allocation8 + $0x60] sm:$0xff] }
 0x115   :  { %2565 = vmatprep.subr.bf16.mxu1 %v2564_v1  ;;  %v2595_v62 = vpack.c.bf16 %v1618_v59, %v1617_v58 }
 0x116   :  { %2535 = vmatpush3.bf16.msra.mxu0 %v2534_v10  ;;  %v2598_v10 = vpack.c.bf16 %v1620_v8, %v1619_v7 }
 0x117   :  { %2537 = vmatprep.subr.bf16.mxu0 %v2536_v12  ;;  %v2804_v12 = vmov 0.0  }
 0x118   :  { %2567 = vmatpush3.bf16.msra.mxu1 %v2566_v11 }
 0x119   :  { %2569 = vmatprep.subr.bf16.mxu1 %v2568_v16 }
 0x11a   :  { %2539 = vmatpush3.bf16.msra.mxu0 %v2538_v22 }
 0x11b   :  { %2541 = vmatprep.subr.bf16.mxu0 %v2540_v27 }
 0x11c   :  { %2571 = vmatpush3.bf16.msra.mxu1 %v2570_v26 }
 0x11d   :  { %2573 = vmatprep.subr.bf16.mxu1 %v2572_v30 }
 0x11e   :  { %2543 = vmatpush3.bf16.msra.mxu0 %v2542_v31 }
 0x11f   :  { %2576 = vmatprep.subr.bf16.mxu0 %v2802_v63 }
 0x120   :  { %2575 = vmatpush3.bf16.msra.mxu1 %v2574_v32 }
 0x121   :  { %1529 = vmatmul.mubr.f32.vlgmr.msra.gmra.mrb[10].mxu0 %v736_v33 }
 0x122   :  { %2578 = vmatpush3.bf16.msra.mxu0 %v2577_v0  ;;  %2189 = vmatprep.mubr.msk.f32.mxu0 %vm2803_vm0, %v2804_v12 }
 0x123   :  { %1599 = vmatmul.mubr.f32.vlgmr.msra.gmra.mrb[10].mxu1 %v738_v34  ;;  %2579 = vmatprep.subr.bf16.mxu0 %v2802_v63 }
 0x126   :  { %2581 = vmatpush3.bf16.msra.mxu0 %v2580_v4 }
 0x127   :  { %2582 = vmatprep.subr.bf16.mxu0 %v2802_v63 }
 0x12a   :  { %2584 = vmatpush3.bf16.msra.mxu0 %v2583_v47 }
 0x12b   :  { %2585 = vmatprep.subr.bf16.mxu0 %v2802_v63 }
 0x12e   :  { %2587 = vmatpush3.bf16.msra.mxu0 %v2586_v50 }
 0x12f   :  { %2588 = vmatprep.subr.bf16.mxu0 %v2802_v63 }
 0x132   :  { %2590 = vmatpush3.bf16.msra.mxu0 %v2589_v54 }
 0x133   :  { %2591 = vmatprep.subr.bf16.mxu0 %v2802_v63 }
 0x136   :  { %2593 = vmatpush3.bf16.msra.mxu0 %v2592_v52 }
 0x137   :  { %2594 = vmatprep.subr.bf16.mxu0 %v2802_v63 }
 0x13a   :  { %2596 = vmatpush3.bf16.msra.mxu0 %v2595_v62 }
 0x13b   :  { %2597 = vmatprep.subr.bf16.mxu0 %v2802_v63  ;;  %v1719_v63 = vld [vmem:[#allocation10] ss:$0 sm:$0xff] }
 0x13e   :  { %2599 = vmatpush3.bf16.msra.mxu0 %v2598_v10 }
 0x154   :  { %v1752_v36 = vpop.f32.mrb[0].mxu0 }
 0x155   :  { %v1753_v24 = vpop.f32.mrb[1].mxu0 }
 0x156   :  { %v1787_v45 = vpop.f32.mrb[0].mxu1  ;;  %v1754_v38 = vadd.f32 %v1753_v24, %v1752_v36 }
 0x157   :  { %v1788_v39 = vpop.f32.mrb[1].mxu1 }
 0x158   :  { %v1789_v40 = vadd.f32 %v1788_v39, %v1787_v45  ;;  %v831_v41 = vadd.f32 %v1754_v38, %v1718_v37 }
 0x15a   :  { %v901_v9 = vadd.f32 %v1789_v40, %v831_v41 }
 0x174   :  { %v1822_v57 = vpop.f32.mrb[2].mxu0 }
 0x175   :  { %v1823_v60 = vpop.f32.mrb[3].mxu0 }
 0x176   :  { %v1857_v61 = vpop.f32.mrb[2].mxu1  ;;  %v1824_v1 = vadd.f32 %v1823_v60, %v1822_v57 }
 0x177   :  { %v1858_v2 = vpop.f32.mrb[3].mxu1 }
 0x178   :  { %v1859_v3 = vadd.f32 %v1858_v2, %v1857_v61  ;;  %v971_v6 = vadd.f32 %v1824_v1, %v901_v9 }
 0x17a   :  { %v1041_v11 = vadd.f32 %v1859_v3, %v971_v6 }
 0x194   :  { %v1892_v14 = vpop.f32.mrb[4].mxu0 }
 0x195   :  { %v1893_v15 = vpop.f32.mrb[5].mxu0 }
 0x196   :  { %v1927_v13 = vpop.f32.mrb[4].mxu1  ;;  %v1894_v16 = vadd.f32 %v1893_v15, %v1892_v14 }
 0x197   :  { %v1928_v18 = vpop.f32.mrb[5].mxu1 }
 0x198   :  { %v1929_v21 = vadd.f32 %v1928_v18, %v1927_v13  ;;  %v1111_v19 = vadd.f32 %v1894_v16, %v1041_v11 }
 0x19a   :  { %v1181_v25 = vadd.f32 %v1929_v21, %v1111_v19 }
 0x1b4   :  { %v1962_v20 = vpop.f32.mrb[6].mxu0 }
 0x1b5   :  { %v1963_v22 = vpop.f32.mrb[7].mxu0 }
 0x1b6   :  { %v1997_v26 = vpop.f32.mrb[6].mxu1  ;;  %v1964_v27 = vadd.f32 %v1963_v22, %v1962_v20 }
 0x1b7   :  { %v1998_v28 = vpop.f32.mrb[7].mxu1 }
 0x1b8   :  { %v1999_v29 = vadd.f32 %v1998_v28, %v1997_v26  ;;  %v1251_v30 = vadd.f32 %v1964_v27, %v1181_v25 }
 0x1ba   :  { %v1321_v35 = vadd.f32 %v1999_v29, %v1251_v30 }
 0x1d4   :  { %v2032_v17 = vpop.f32.mrb[8].mxu0 }
 0x1d5   :  { %v2033_v31 = vpop.f32.mrb[9].mxu0 }
 0x1d6   :  { %v2067_v32 = vpop.f32.mrb[8].mxu1  ;;  %v2034_v33 = vadd.f32 %v2033_v31, %v2032_v17 }
 0x1d7   :  { %v2068_v34 = vpop.f32.mrb[9].mxu1 }
 0x1d8   :  { %v2069_v36 = vadd.f32 %v2068_v34, %v2067_v32  ;;  %v1391_v37 = vadd.f32 %v2034_v33, %v1321_v35 }
 0x1da   :  { %v1461_v24 = vadd.f32 %v2069_v36, %v1391_v37 }
 0x1f4   :  { %v2102_v45 = vpop.f32.mrb[10].mxu0 }
 0x1f5   :  { %v2103_v38 = vpop.f32.mrb[11].mxu0 }
 0x1f6   :  { %v2137_v39 = vpop.f32.mrb[10].mxu1  ;;  %v2104_v40 = vadd.f32 %v2103_v38, %v2102_v45 }
 0x1f7   :  { %v2138_v41 = vpop.f32.mrb[11].mxu1 }
 0x1f8   :  { %v2139_v9 = vadd.f32 %v2138_v41, %v2137_v39  ;;  %v1531_v42 = vadd.f32 %v2104_v40, %v1461_v24 }
 0x1fa   :  { %v1601_v43 = vadd.f32 %v2139_v9, %v1531_v42 }
 0x1fc   :  { %v1604_v44 = vmax.f32 %v1601_v43, 0.0 }
 0x1fe   :  { %2190 = vmatmul.mubr.f32.vlgmr.msra.gmra.mrb[12].mxu0 %v1604_v44 }
 0x2d1   :  { %v1694_v0 = vpop.f32.mrb[12].mxu0 }
 0x2d2   :  { %v1695_v23 = vadd.f32 %v1719_v63, %v1694_v0  ;;  %v2191_v4 = vpop.f32.mrb[13].mxu0 }
 0x2d4   :  { %1698 = vst [vmem:[#allocation11] sm:$0xff] %v1695_v23 }
 0x2d5   :  { %1703 = vsyncadd [#allocation4], 96  ;;  %s2805_s4 = smov [#allocation11]  }
 0x2d6   :  { %s1704_s28 = sshll.u32 %s2805_s4, 4  ;;  %s1705_s28 = int_to_ptr.vmem [resolvable:$true] %s1704_s28 }
 0x2d7   :  { %s2762_s29 = scalar_lea.vmem %s1705_s28, 32  ;;  %s2766_s6 = scalar_lea.vmem %s1705_s28, 128 }
 0x2d8   :  { %p2763_p12 = scmp.ne.s32.totalorder %s1705_s28, %s2762_s29  ;;  %p2767_p13 = scmp.lt.s32.totalorder %s1705_s28, %s1705_s28 }
 0x2d9   :  { %p2768_p0 = scmp.lt.s32.totalorder %s2766_s6, %s2762_s29 }
 0x2db   :  { %p2769_p1 = por %p2768_p0, %p2767_p13 }
 0x2dd   :  { %p2770_p2 = pnand %p2769_p1, %p2763_p12 }
 0x2df   :  { %2773 = shalt.err (!%p2770_p2)
}
 0x2e0   :  { %s2774_s9 = scalar_lea.hbm %s3021_s5, 32 }
 0x2e1   :  { %p2775_p3 = scmp.ne.s32.totalorder %s3021_s5, %s2774_s9  ;;  %p2778_p4 = scmp.lt.u32.totalorder %s2774_s9, %s3021_s5 }
 0x2e3   :  { %p2780_p5 = pnand %p2778_p4, %p2775_p3 }
 0x2e5   :  { %2783 = shalt.err (!%p2780_p5)
}
 0x2e6   :  { %s2806_s15 = smov 32   ;;  %s2807_s16 = smov 2  }
 0x2e7   :  { %1710 = dma.vmem_to_hbm [thread:$0]  %s1705_s28, 32, %s3021_s5, [#allocation4], %s2806_s15, %s2806_s15, %s2807_s16  }
 0x2e8   :  { %2790 = dma.done.wait [#allocation4], 128  }
 0x2e9   :  { %2791 = vsyncadd [#allocation4], 4294967168 }
 0x2ea   :  { %1714 = vsyncpa [#allocation3], 1 }
 0x2eb   :  { %1715 = vsyncpa [#allocation6], 1 }
 0x2ec   :  { %1716 = vsyncpa [#allocation9], 1 }
 0x2ed   :  { %1717 = vsyncpa [#allocation4], 1 }

</bundles_post_ra>
